<compile_context>
chip_gen: v7x
topology: tpu7x:2x2x1
jax: 0.10.0
libtpu: 0.0.40
codegen_flags: <defaults>
</compile_context>

<pallas_src>
import functools

import jax
import jax.numpy as jnp
from jax import lax
from jax.experimental import pallas as pl
from jax.experimental.pallas import tpu as pltpu

# dot_general dims for A (M,K) · B (N,K)^T -> (M,N): contract last dim of both.
_NT_DIMS = (((1,), (1,)), ((), ()))


def _gat_block_kernel(x_ref, adjb_ref, wpack_ref, vec_ref, selsT_ref, seleT_ref,
                      out_ref, *, hid, fin_pad):
    f32 = jnp.float32
    bf16 = jnp.bfloat16

    x = x_ref[0].astype(bf16)              # (M, fin_pad)  node features (block of graphs)
    adj_bias = adjb_ref[...]               # (M, M) f32    block-diag: 0 on edges, -1e9 else
    # Aligned Ref slices (fin_pad is a multiple of 16): no relayout copies.
    w1_aug = wpack_ref[:fin_pad, :]        # (fin_pad, H+1) bf16 = [W1 | W1 a_dst1^T]
    w2_aug = wpack_ref[fin_pad:fin_pad + hid, :]   # (H, H+1)  bf16 = [W2 | W2 a_dst2^T]
    vec = vec_ref[...]                     # (8, P) f32 packed small vectors

    w_as1 = vec[0:1, :fin_pad].astype(bf16)   # (1, fin_pad) = a_src1 W1^T (zero-padded)
    w_as2 = vec[1:2, :hid].astype(bf16)       # (1, H)       = a_src2 W2^T
    b1 = vec[2:3, :hid]                       # (1, H) f32
    b2 = vec[3:4, :hid]                       # (1, H) f32
    fcw2 = vec[4:6, :hid].astype(bf16)        # (2, H)  rows: [fcw_start; fcw_end]
    fcb = vec[6:7, 0:1]                       # (1, 1) f32

    def gat_layer(h_in_bf16, w_aug, w_as_row, bias_row):
        # One MXU pass: first H columns are h = h_in W, last column is alpha_dst.
        h_ext = jnp.dot(h_in_bf16, w_aug, preferred_element_type=f32)   # (M, H+1)
        h = h_ext[:, :hid]                                              # (M, H)
        alpha_dst = h_ext[:, hid:hid + 1]                               # (M, 1)
        # alpha_src directly in ROW layout (no transpose, no cross-lane reduce).
        alpha_src_row = lax.dot_general(w_as_row, h_in_bf16, _NT_DIMS,
                                        preferred_element_type=f32)     # (1, M)
        # e[i, j] = LeakyReLU(alpha_dst[i] + alpha_src[j]); i=target, j=source.
        e = alpha_dst + alpha_src_row                                   # (M, M) f32
        e = jnp.where(e > 0, e, 0.2 * e)                                # LeakyReLU(0.2)
        e = e + adj_bias                                                # mask non-edges (f32)
        m = jnp.max(e, axis=-1, keepdims=True)
        p = jnp.exp(e - m)
        att = p / jnp.sum(p, axis=-1, keepdims=True)                    # exact softmax
        agg = jnp.dot(att.astype(bf16), h.astype(bf16),
                      preferred_element_type=f32)                       # (M, H)
        return agg + bias_row

    # conv1 + ELU (clamped exp: dead branch can never overflow).
    h1 = gat_layer(x, w1_aug, w_as1, b1)
    h1 = jnp.where(h1 > 0, h1, jnp.exp(jnp.minimum(h1, 0.0)) - 1.0)
    # conv2
    h2 = gat_layer(h1.astype(bf16), w2_aug, w_as2, b2)

    # fc head: ONE stacked (2,H) NT dot -> (2, M) partial logits, then
    # one-hot gather matmuls emit the lane-dense, lane-padded logit row.
    p2 = lax.dot_general(fcw2, h2.astype(bf16), _NT_DIMS,
                         preferred_element_type=f32).astype(bf16)       # (2, M)
    logits = (jnp.dot(p2[0:1, :], selsT_ref[...], preferred_element_type=f32)
              + jnp.dot(p2[1:2, :], seleT_ref[...], preferred_element_type=f32)
              + fcb)                                                    # (1, E_pad)
    probs = 1.0 / (1.0 + jnp.exp(-logits))                              # exact sigmoid
    out_ref[...] = probs[None]                                          # (1, 1, E_pad)


@functools.partial(jax.jit,
                   static_argnames=("hid", "fin_pad", "graphs_per_block", "num_edges"))
def gat_forward_batched(x_blocks, adj_blk, w_pack, vec_pack, sel_sT, sel_eT, *,
                        hid, fin_pad, graphs_per_block, num_edges):
    nb, M, Fp = x_blocks.shape
    e_pad = sel_sT.shape[1]

    kernel = functools.partial(_gat_block_kernel, hid=hid, fin_pad=fin_pad)

    # Rough cost estimate so XLA can schedule this small custom call sensibly.
    flops_per_block = (
        2 * M * Fp * (hid + 1) + 2 * M * Fp          # conv1 projection + alpha_src
        + 2 * M * hid * (hid + 1) + 2 * M * hid      # conv2 projection + alpha_src
        + 2 * (2 * M * M * hid)                      # two att @ h aggregations
        + 2 * 2 * M * hid                            # stacked fc partials
        + 2 * (2 * M * e_pad)                        # two one-hot gathers
        + 10 * M * M                                 # softmax / mask / LeakyReLU elementwise
    )
    trans_per_block = 2 * M * M + M * hid + e_pad    # exp in softmax, ELU, sigmoid
    bytes_per_block = M * Fp * 4 + e_pad * 4
    shared_bytes = (M * M * 4 + w_pack.size * 2 + vec_pack.size * 4
                    + 2 * M * e_pad * 2)
    cost = pl.CostEstimate(flops=nb * flops_per_block,
                           transcendentals=nb * trans_per_block,
                           bytes_accessed=nb * bytes_per_block + shared_bytes)

    out = pl.pallas_call(
        kernel,
        grid=(nb,),
        out_shape=jax.ShapeDtypeStruct((nb, 1, e_pad), jnp.float32),
        in_specs=[
            pl.BlockSpec((1, M, Fp), lambda b: (b, 0, 0)),      # per-block node features
            pl.BlockSpec((M, M), lambda b: (0, 0)),             # shared block-diag adj bias
            pl.BlockSpec(w_pack.shape, lambda b: (0, 0)),       # shared packed weights
            pl.BlockSpec(vec_pack.shape, lambda b: (0, 0)),     # shared packed vectors
            pl.BlockSpec((M, e_pad), lambda b: (0, 0)),         # shared start selectors
            pl.BlockSpec((M, e_pad), lambda b: (0, 0)),         # shared end selectors
        ],
        out_specs=pl.BlockSpec((1, 1, e_pad), lambda b: (b, 0, 0)),
        compiler_params=pltpu.CompilerParams(dimension_semantics=("parallel",)),
        cost_estimate=cost,
    )(x_blocks, adj_blk, w_pack, vec_pack, sel_sT, sel_eT)

    e_blk = graphs_per_block * num_edges
    probs = out[:, 0, :e_blk].reshape(nb * graphs_per_block, num_edges, 1)
    return probs


# ----------------------------- host-side packing -----------------------------

def pack_params(w1, as1, ad1, b1, w2, as2, ad2, b2, fcw, fcb, *, fin, hid):
    """One-time folding/packing of all parameters into 2 arrays."""
    fin_pad = ((fin + 15) // 16) * 16   # 16-aligned: clean sublane tiles for f32 and bf16

    # Fold att_dst into the projection matmul: X @ [W | W a_dst^T].
    w1_aug = jnp.concatenate([w1, w1 @ ad1.reshape(hid, 1)], axis=1)    # (fin, H+1)
    w2_aug = jnp.concatenate([w2, w2 @ ad2.reshape(hid, 1)], axis=1)    # (H,  H+1)
    w_pack = jnp.zeros((fin_pad + hid, hid + 1), jnp.float32)
    w_pack = w_pack.at[:fin].set(w1_aug)
    w_pack = w_pack.at[fin_pad:fin_pad + hid].set(w2_aug)
    w_pack = w_pack.astype(jnp.bfloat16)          # MXU-only operand -> store bf16

    vcols = max(fin_pad, hid)

    def row(v):
        v = jnp.asarray(v, jnp.float32).reshape(1, -1)
        return jnp.pad(v, ((0, 0), (0, vcols - v.shape[1])))

    vec_pack = jnp.concatenate([
        row(as1.reshape(1, hid) @ w1.T),       # 0: a_src1 folded through W1 (len fin)
        row(as2.reshape(1, hid) @ w2.T),       # 1: a_src2 folded through W2
        row(b1), row(b2),                      # 2, 3: GATConv biases (f32)
        row(fcw[:hid, 0]), row(fcw[hid:, 0]),  # 4, 5: fc weight halves (stacked in kernel)
        row(jnp.reshape(fcb, (1,))),           # 6: fc bias in col 0
        jnp.zeros((1, vcols), jnp.float32),    # 7: pad to a full 8-sublane tile
    ], axis=0)
    return w_pack, vec_pack, fin_pad


def build_graph_adj_mask(start, end, num_nodes):
    """Per-graph adjacency (incl. self loops): adj[target, source] = 1."""
    adj = jnp.zeros((num_nodes, num_nodes), jnp.float32)
    adj = adj.at[end, start].set(1.0)
    diag = jnp.arange(num_nodes)
    adj = adj.at[diag, diag].set(1.0)              # add_self_loops=True
    return adj


def build_block_adj_bias(adj_mask, graphs_per_block):
    """Block-diagonal additive mask for graphs_per_block stacked graphs."""
    n = adj_mask.shape[0]
    g_bias = jnp.where(adj_mask > 0, 0.0, -1e9).astype(jnp.float32)
    m = graphs_per_block * n
    blk = jnp.full((m, m), -1e9, jnp.float32)
    for g in range(graphs_per_block):
        s = g * n
        blk = blk.at[s:s + n, s:s + n].set(g_bias)
    return blk


def build_block_selectors(start, end, num_nodes, num_edges, graphs_per_block, e_pad):
    """Pre-transposed one-hot edge selectors, block-stacked and lane-padded."""
    sel_s = jax.nn.one_hot(start, num_nodes, dtype=jnp.float32).T     # (N, E)
    sel_e = jax.nn.one_hot(end, num_nodes, dtype=jnp.float32).T
    m = graphs_per_block * num_nodes
    s_blk = jnp.zeros((m, e_pad), jnp.float32)
    e_blk = jnp.zeros((m, e_pad), jnp.float32)
    for g in range(graphs_per_block):
        rn, re = g * num_nodes, g * num_edges
        s_blk = s_blk.at[rn:rn + num_nodes, re:re + num_edges].set(sel_s)
        e_blk = e_blk.at[rn:rn + num_nodes, re:re + num_edges].set(sel_e)
    return s_blk.astype(jnp.bfloat16), e_blk.astype(jnp.bfloat16)


# ----------------------------- pure-JAX reference ----------------------------

def reference_forward(x_graphs, adj_mask, start, end,
                      w1, as1, ad1, b1, w2, as2, ad2, b2, fcw, fcb):
    bias = jnp.where(adj_mask > 0, 0.0, -1e9)

    def gat(h, w, a_s, a_d, b):
        hp = h @ w
        a_dst = hp @ a_d.reshape(-1, 1)           # (N, 1)
        a_src = hp @ a_s.reshape(-1, 1)           # (N, 1)
        e = a_dst + a_src.T                       # e[target, source]
        e = jnp.where(e > 0, e, 0.2 * e) + bias
        att = jax.nn.softmax(e, axis=-1)
        return att @ hp + b.reshape(1, -1)

    def single(x0):
        h1 = jax.nn.elu(gat(x0, w1, as1, ad1, b1))
        h2 = gat(h1, w2, as2, ad2, b2)
        feats = jnp.concatenate([h2[start], h2[end]], axis=1)
        return jax.nn.sigmoid(feats @ fcw + fcb)  # (E, 1)

    return jax.vmap(single)(x_graphs)


# ------------------------------------ main ------------------------------------

if __name__ == "__main__":
    key = jax.random.PRNGKey(0)

    # Module-consistent small shapes.
    num_nodes = 16
    num_node_features = 4
    sentence_embedding_dim = 32
    hidden_channels = 32
    num_heads = 1
    fin = num_node_features + sentence_embedding_dim     # 36
    hid = hidden_channels * num_heads                     # 32

    # Batch of independent forward passes (same graph topology, different
    # features / sentences), packed 8 graphs per block -> M = 128 rows/matmul.
    graphs_per_block = 8
    num_blocks = 4
    batch = graphs_per_block * num_blocks                 # 32 graphs per call

    # Deterministic graph: ring + chords (unique edges).
    ring_src = list(range(num_nodes))
    ring_dst = [(i + 1) % num_nodes for i in range(num_nodes)]
    chords = [(0, 8), (3, 11), (5, 13), (7, 15)]
    start = jnp.array(ring_src + [c[0] for c in chords], dtype=jnp.int32)
    end = jnp.array(ring_dst + [c[1] for c in chords], dtype=jnp.int32)
    num_edges = int(start.shape[0])                       # 20

    keys = jax.random.split(key, 12)
    x_nodes = jax.random.normal(keys[0], (batch, num_nodes, num_node_features), jnp.float32)

    # TODO(synk): frozen DistilBERT encoder + tokenizer has no Pallas equivalent;
    # the per-graph [CLS] sentence embedding is a deterministic precomputed vector.
    sent_emb = jax.random.normal(keys[1], (batch, sentence_embedding_dim), jnp.float32)

    sent_rep = jnp.broadcast_to(sent_emb[:, None, :],
                                (batch, num_nodes, sentence_embedding_dim))
    x0 = jnp.concatenate([x_nodes, sent_rep], axis=2)     # (B, N, fin)

    # Deterministic parameter init (Glorot-ish).
    def glorot(k, shape):
        fan_in, fan_out = shape[0], shape[-1]
        return jnp.sqrt(2.0 / (fan_in + fan_out)) * jax.random.normal(k, shape, jnp.float32)

    w1 = glorot(keys[2], (fin, hid))
    as1 = glorot(keys[3], (1, hid))
    ad1 = glorot(keys[4], (1, hid))
    w2 = glorot(keys[5], (hid, hid))
    as2 = glorot(keys[6], (1, hid))
    ad2 = glorot(keys[7], (1, hid))
    fcw = glorot(keys[8], (2 * hid, 1))
    b1 = 0.1 * jax.random.normal(keys[9], (1, hid), jnp.float32)
    b2 = 0.1 * jax.random.normal(keys[10], (1, hid), jnp.float32)
    fcb = 0.1 * jax.random.normal(keys[11], (), jnp.float32)

    # Host-side one-time packing / folding (aligned layouts).
    w_pack, vec_pack, fin_pad = pack_params(w1, as1, ad1, b1, w2, as2, ad2, b2,
                                            fcw, fcb, fin=fin, hid=hid)
    x_pad = jnp.pad(x0, ((0, 0), (0, 0), (0, fin_pad - fin)))           # zero-pad K dim
    x_blocks = x_pad.reshape(num_blocks, graphs_per_block * num_nodes, fin_pad)

    adj_mask = build_graph_adj_mask(start, end, num_nodes)
    adj_blk = build_block_adj_bias(adj_mask, graphs_per_block)          # (128, 128)

    e_blk = graphs_per_block * num_edges                                # 160
    e_pad = ((e_blk + 127) // 128) * 128                                # 256 (full lanes)
    sel_sT, sel_eT = build_block_selectors(start, end, num_nodes, num_edges,
                                           graphs_per_block, e_pad)

    edge_probs = gat_forward_batched(x_blocks, adj_blk, w_pack, vec_pack, sel_sT, sel_eT,
                                     hid=hid, fin_pad=fin_pad,
                                     graphs_per_block=graphs_per_block,
                                     num_edges=num_edges)
    edge_probs = jax.block_until_ready(edge_probs)

    assert edge_probs.shape == (batch, num_edges, 1)
    assert bool(jnp.all(jnp.isfinite(edge_probs)))
    assert bool(jnp.all((edge_probs >= 0.0) & (edge_probs <= 1.0)))

    # Numerical check against a pure-JAX f32 reference (bf16 MXU operands in the
    # kernel -> loose tolerance).
    ref = reference_forward(x0, adj_mask, start, end,
                            w1, as1, ad1, b1, w2, as2, ad2, b2, fcw, fcb)
    max_err = float(jnp.max(jnp.abs(edge_probs - ref)))
    assert max_err < 5e-2, f"max abs error vs reference too large: {max_err}"

    print("KERNEL_OK")
</pallas_src>

<mosaic_0001>
module attributes {stable_mosaic.version = 11 : i64} {
  func.func @_gat_block_kernel(%arg0: i32, %arg1: memref<1x128x48xf32, #tpu.memory_space<vmem>>, %arg2: memref<128x128xf32, #tpu.memory_space<vmem>>, %arg3: memref<80x33xbf16, #tpu.memory_space<vmem>>, %arg4: memref<8x48xf32, #tpu.memory_space<vmem>>, %arg5: memref<128x256xbf16, #tpu.memory_space<vmem>>, %arg6: memref<128x256xbf16, #tpu.memory_space<vmem>>, %arg7: memref<1x1x256xf32, #tpu.memory_space<vmem>>) attributes {dimension_semantics = [#tpu.dimension_semantics<parallel>], iteration_bounds = array<i64: 4>, scalar_prefetch = 0 : i64, scratch_operands = 0 : i64, tpu.core_type = #tpu.core_type<tc>, window_params = [{transform_indices = @transform_0, window_bounds = array<i64: 1, 128, 48>}, {pipeline_mode = #tpu.pipeline_mode<synchronous>, transform_indices = @transform_1, window_bounds = array<i64: 128, 128>}, {pipeline_mode = #tpu.pipeline_mode<synchronous>, transform_indices = @transform_2, window_bounds = array<i64: 80, 33>}, {pipeline_mode = #tpu.pipeline_mode<synchronous>, transform_indices = @transform_3, window_bounds = array<i64: 8, 48>}, {pipeline_mode = #tpu.pipeline_mode<synchronous>, transform_indices = @transform_4, window_bounds = array<i64: 128, 256>}, {pipeline_mode = #tpu.pipeline_mode<synchronous>, transform_indices = @transform_5, window_bounds = array<i64: 128, 256>}, {transform_indices = @transform_6, window_bounds = array<i64: 1, 1, 256>}]} {
    %c0 = arith.constant 0 : index
    %c0_0 = arith.constant 0 : index
    %c0_1 = arith.constant 0 : index
    %0 = vector.load %arg1[%c0, %c0_0, %c0_1] : memref<1x128x48xf32, #tpu.memory_space<vmem>>, vector<1x128x48xf32>
    %1 = vector.shape_cast %0 : vector<1x128x48xf32> to vector<128x48xf32>
    %2 = arith.truncf %1 : vector<128x48xf32> to vector<128x48xbf16>
    %c0_2 = arith.constant 0 : index
    %c0_3 = arith.constant 0 : index
    %3 = vector.load %arg2[%c0_2, %c0_3] : memref<128x128xf32, #tpu.memory_space<vmem>>, vector<128x128xf32>
    %c0_4 = arith.constant 0 : index
    %c0_5 = arith.constant 0 : index
    %4 = vector.load %arg3[%c0_4, %c0_5] : memref<80x33xbf16, #tpu.memory_space<vmem>>, vector<48x33xbf16>
    %c48 = arith.constant 48 : index
    %c0_6 = arith.constant 0 : index
    %5 = vector.load %arg3[%c48, %c0_6] : memref<80x33xbf16, #tpu.memory_space<vmem>>, vector<32x33xbf16>
    %c0_7 = arith.constant 0 : index
    %c0_8 = arith.constant 0 : index
    %6 = vector.load %arg4[%c0_7, %c0_8] : memref<8x48xf32, #tpu.memory_space<vmem>>, vector<8x48xf32>
    %7 = vector.extract_strided_slice %6 {offsets = [0, 0], sizes = [1, 48], strides = [1, 1]} : vector<8x48xf32> to vector<1x48xf32>
    %8 = arith.truncf %7 : vector<1x48xf32> to vector<1x48xbf16>
    %9 = vector.extract_strided_slice %6 {offsets = [1, 0], sizes = [1, 32], strides = [1, 1]} : vector<8x48xf32> to vector<1x32xf32>
    %10 = arith.truncf %9 : vector<1x32xf32> to vector<1x32xbf16>
    %11 = vector.extract_strided_slice %6 {offsets = [2, 0], sizes = [1, 32], strides = [1, 1]} : vector<8x48xf32> to vector<1x32xf32>
    %12 = vector.extract_strided_slice %6 {offsets = [3, 0], sizes = [1, 32], strides = [1, 1]} : vector<8x48xf32> to vector<1x32xf32>
    %13 = vector.extract_strided_slice %6 {offsets = [4, 0], sizes = [2, 32], strides = [1, 1]} : vector<8x48xf32> to vector<2x32xf32>
    %14 = arith.truncf %13 : vector<2x32xf32> to vector<2x32xbf16>
    %15 = vector.extract_strided_slice %6 {offsets = [6, 0], sizes = [1, 1], strides = [1, 1]} : vector<8x48xf32> to vector<1x1xf32>
    %cst = arith.constant dense<0.000000e+00> : vector<128x33xf32>
    %16 = tpu.matmul %2, %4, %cst {dimension_numbers = #tpu.dot_dimension_numbers<[1], [0], [0], [1], [0, 0, 1, 1], [], []>} : vector<128x48xbf16>, vector<48x33xbf16>, vector<128x33xf32> -> vector<128x33xf32>
    %17 = vector.extract_strided_slice %16 {offsets = [0, 0], sizes = [128, 32], strides = [1, 1]} : vector<128x33xf32> to vector<128x32xf32>
    %18 = vector.extract_strided_slice %16 {offsets = [0, 32], sizes = [128, 1], strides = [1, 1]} : vector<128x33xf32> to vector<128x1xf32>
    %cst_9 = arith.constant dense<0.000000e+00> : vector<1x128xf32>
    %19 = tpu.matmul %8, %2, %cst_9 {dimension_numbers = #tpu.dot_dimension_numbers<[1], [1], [0], [0], [0, 0, 1, 0], [], []>} : vector<1x48xbf16>, vector<128x48xbf16>, vector<1x128xf32> -> vector<1x128xf32>
    %20 = vector.broadcast %18 : vector<128x1xf32> to vector<128x128xf32>
    %21 = vector.broadcast %19 : vector<1x128xf32> to vector<128x128xf32>
    %22 = arith.addf %20, %21 : vector<128x128xf32>
    %cst_10 = arith.constant 0.000000e+00 : f32
    %23 = vector.broadcast %cst_10 : f32 to vector<128x128xf32>
    %24 = arith.cmpf ogt, %22, %23 : vector<128x128xf32>
    %cst_11 = arith.constant 2.000000e-01 : f32
    %25 = vector.broadcast %cst_11 : f32 to vector<128x128xf32>
    %26 = arith.mulf %25, %22 : vector<128x128xf32>
    %27 = arith.select %24, %22, %26 : vector<128x128xi1>, vector<128x128xf32>
    %28 = arith.addf %27, %3 : vector<128x128xf32>
    %cst_12 = arith.constant dense<0xFF800000> : vector<128xf32>
    %29 = vector.multi_reduction <maximumf>, %28, %cst_12 [1] : vector<128x128xf32> to vector<128xf32>
    %30 = vector.shape_cast %29 : vector<128xf32> to vector<128x1xf32>
    %31 = vector.broadcast %30 : vector<128x1xf32> to vector<128x128xf32>
    %32 = arith.subf %28, %31 : vector<128x128xf32>
    %33 = math.exp %32 : vector<128x128xf32>
    %cst_13 = arith.constant dense<0.000000e+00> : vector<128xf32>
    %34 = vector.multi_reduction <add>, %33, %cst_13 [1] : vector<128x128xf32> to vector<128xf32>
    %35 = vector.shape_cast %34 : vector<128xf32> to vector<128x1xf32>
    %36 = vector.broadcast %35 : vector<128x1xf32> to vector<128x128xf32>
    %37 = arith.divf %33, %36 : vector<128x128xf32>
    %38 = arith.truncf %37 : vector<128x128xf32> to vector<128x128xbf16>
    %39 = arith.truncf %17 : vector<128x32xf32> to vector<128x32xbf16>
    %cst_14 = arith.constant dense<0.000000e+00> : vector<128x32xf32>
    %40 = tpu.matmul %38, %39, %cst_14 {dimension_numbers = #tpu.dot_dimension_numbers<[1], [0], [0], [1], [0, 0, 1, 1], [], []>} : vector<128x128xbf16>, vector<128x32xbf16>, vector<128x32xf32> -> vector<128x32xf32>
    %41 = vector.broadcast %11 : vector<1x32xf32> to vector<128x32xf32>
    %42 = arith.addf %40, %41 : vector<128x32xf32>
    %cst_15 = arith.constant 0.000000e+00 : f32
    %43 = vector.broadcast %cst_15 : f32 to vector<128x32xf32>
    %44 = arith.cmpf ogt, %42, %43 : vector<128x32xf32>
    %cst_16 = arith.constant 0.000000e+00 : f32
    %45 = vector.broadcast %cst_16 : f32 to vector<128x32xf32>
    %46 = arith.minimumf %42, %45 : vector<128x32xf32>
    %47 = math.exp %46 : vector<128x32xf32>
    %cst_17 = arith.constant 1.000000e+00 : f32
    %48 = vector.broadcast %cst_17 : f32 to vector<128x32xf32>
    %49 = arith.subf %47, %48 : vector<128x32xf32>
    %50 = arith.select %44, %42, %49 : vector<128x32xi1>, vector<128x32xf32>
    %51 = arith.truncf %50 : vector<128x32xf32> to vector<128x32xbf16>
    %cst_18 = arith.constant dense<0.000000e+00> : vector<128x33xf32>
    %52 = tpu.matmul %51, %5, %cst_18 {dimension_numbers = #tpu.dot_dimension_numbers<[1], [0], [0], [1], [0, 0, 1, 1], [], []>} : vector<128x32xbf16>, vector<32x33xbf16>, vector<128x33xf32> -> vector<128x33xf32>
    %53 = vector.extract_strided_slice %52 {offsets = [0, 0], sizes = [128, 32], strides = [1, 1]} : vector<128x33xf32> to vector<128x32xf32>
    %54 = vector.extract_strided_slice %52 {offsets = [0, 32], sizes = [128, 1], strides = [1, 1]} : vector<128x33xf32> to vector<128x1xf32>
    %cst_19 = arith.constant dense<0.000000e+00> : vector<1x128xf32>
    %55 = tpu.matmul %10, %51, %cst_19 {dimension_numbers = #tpu.dot_dimension_numbers<[1], [1], [0], [0], [0, 0, 1, 0], [], []>} : vector<1x32xbf16>, vector<128x32xbf16>, vector<1x128xf32> -> vector<1x128xf32>
    %56 = vector.broadcast %54 : vector<128x1xf32> to vector<128x128xf32>
    %57 = vector.broadcast %55 : vector<1x128xf32> to vector<128x128xf32>
    %58 = arith.addf %56, %57 : vector<128x128xf32>
    %cst_20 = arith.constant 0.000000e+00 : f32
    %59 = vector.broadcast %cst_20 : f32 to vector<128x128xf32>
    %60 = arith.cmpf ogt, %58, %59 : vector<128x128xf32>
    %cst_21 = arith.constant 2.000000e-01 : f32
    %61 = vector.broadcast %cst_21 : f32 to vector<128x128xf32>
    %62 = arith.mulf %61, %58 : vector<128x128xf32>
    %63 = arith.select %60, %58, %62 : vector<128x128xi1>, vector<128x128xf32>
    %64 = arith.addf %63, %3 : vector<128x128xf32>
    %cst_22 = arith.constant dense<0xFF800000> : vector<128xf32>
    %65 = vector.multi_reduction <maximumf>, %64, %cst_22 [1] : vector<128x128xf32> to vector<128xf32>
    %66 = vector.shape_cast %65 : vector<128xf32> to vector<128x1xf32>
    %67 = vector.broadcast %66 : vector<128x1xf32> to vector<128x128xf32>
    %68 = arith.subf %64, %67 : vector<128x128xf32>
    %69 = math.exp %68 : vector<128x128xf32>
    %cst_23 = arith.constant dense<0.000000e+00> : vector<128xf32>
    %70 = vector.multi_reduction <add>, %69, %cst_23 [1] : vector<128x128xf32> to vector<128xf32>
    %71 = vector.shape_cast %70 : vector<128xf32> to vector<128x1xf32>
    %72 = vector.broadcast %71 : vector<128x1xf32> to vector<128x128xf32>
    %73 = arith.divf %69, %72 : vector<128x128xf32>
    %74 = arith.truncf %73 : vector<128x128xf32> to vector<128x128xbf16>
    %75 = arith.truncf %53 : vector<128x32xf32> to vector<128x32xbf16>
    %cst_24 = arith.constant dense<0.000000e+00> : vector<128x32xf32>
    %76 = tpu.matmul %74, %75, %cst_24 {dimension_numbers = #tpu.dot_dimension_numbers<[1], [0], [0], [1], [0, 0, 1, 1], [], []>} : vector<128x128xbf16>, vector<128x32xbf16>, vector<128x32xf32> -> vector<128x32xf32>
    %77 = vector.broadcast %12 : vector<1x32xf32> to vector<128x32xf32>
    %78 = arith.addf %76, %77 : vector<128x32xf32>
    %79 = arith.truncf %78 : vector<128x32xf32> to vector<128x32xbf16>
    %cst_25 = arith.constant dense<0.000000e+00> : vector<2x128xf32>
    %80 = tpu.matmul %14, %79, %cst_25 {dimension_numbers = #tpu.dot_dimension_numbers<[1], [1], [0], [0], [0, 0, 1, 0], [], []>} : vector<2x32xbf16>, vector<128x32xbf16>, vector<2x128xf32> -> vector<2x128xf32>
    %81 = arith.truncf %80 : vector<2x128xf32> to vector<2x128xbf16>
    %82 = vector.extract_strided_slice %81 {offsets = [0, 0], sizes = [1, 128], strides = [1, 1]} : vector<2x128xbf16> to vector<1x128xbf16>
    %c0_26 = arith.constant 0 : index
    %c0_27 = arith.constant 0 : index
    %83 = vector.load %arg5[%c0_26, %c0_27] : memref<128x256xbf16, #tpu.memory_space<vmem>>, vector<128x256xbf16>
    %cst_28 = arith.constant dense<0.000000e+00> : vector<1x256xf32>
    %84 = tpu.matmul %82, %83, %cst_28 {dimension_numbers = #tpu.dot_dimension_numbers<[1], [0], [0], [1], [0, 0, 1, 1], [], []>} : vector<1x128xbf16>, vector<128x256xbf16>, vector<1x256xf32> -> vector<1x256xf32>
    %85 = vector.extract_strided_slice %81 {offsets = [1, 0], sizes = [1, 128], strides = [1, 1]} : vector<2x128xbf16> to vector<1x128xbf16>
    %c0_29 = arith.constant 0 : index
    %c0_30 = arith.constant 0 : index
    %86 = vector.load %arg6[%c0_29, %c0_30] : memref<128x256xbf16, #tpu.memory_space<vmem>>, vector<128x256xbf16>
    %cst_31 = arith.constant dense<0.000000e+00> : vector<1x256xf32>
    %87 = tpu.matmul %85, %86, %cst_31 {dimension_numbers = #tpu.dot_dimension_numbers<[1], [0], [0], [1], [0, 0, 1, 1], [], []>} : vector<1x128xbf16>, vector<128x256xbf16>, vector<1x256xf32> -> vector<1x256xf32>
    %88 = arith.addf %84, %87 : vector<1x256xf32>
    %89 = vector.broadcast %15 : vector<1x1xf32> to vector<1x256xf32>
    %90 = arith.addf %88, %89 : vector<1x256xf32>
    %cst_32 = arith.constant 0.000000e+00 : f32
    %91 = vector.broadcast %cst_32 : f32 to vector<1x256xf32>
    %92 = arith.subf %91, %90 : vector<1x256xf32>
    %93 = math.exp %92 : vector<1x256xf32>
    %cst_33 = arith.constant 1.000000e+00 : f32
    %94 = vector.broadcast %cst_33 : f32 to vector<1x256xf32>
    %95 = arith.addf %94, %93 : vector<1x256xf32>
    %cst_34 = arith.constant 1.000000e+00 : f32
    %96 = vector.broadcast %cst_34 : f32 to vector<1x256xf32>
    %97 = arith.divf %96, %95 : vector<1x256xf32>
    %98 = vector.shape_cast %97 : vector<1x256xf32> to vector<1x1x256xf32>
    %c0_35 = arith.constant 0 : index
    %c0_36 = arith.constant 0 : index
    %c0_37 = arith.constant 0 : index
    %99 = vector.load %arg7[%c0_35, %c0_36, %c0_37] : memref<1x1x256xf32, #tpu.memory_space<vmem>>, vector<1x1x256xf32>
    tpu.vector_store %arg7[%c0_35, %c0_36, %c0_37], %98 {strides = array<i32>} : memref<1x1x256xf32, #tpu.memory_space<vmem>>, vector<1x1x256xf32>,
    return
  }
  func.func @transform_0(%arg0: i32) -> (i32, i32, i32) {
    %c0_i32 = arith.constant 0 : i32
    %c0_i32_0 = arith.constant 0 : i32
    %c0_i32_1 = arith.constant 0 : i32
    return %arg0, %c0_i32, %c0_i32_0 : i32, i32, i32
  }
  func.func @transform_1(%arg0: i32) -> (i32, i32) {
    %c0_i32 = arith.constant 0 : i32
    %c0_i32_0 = arith.constant 0 : i32
    %c0_i32_1 = arith.constant 0 : i32
    return %c0_i32, %c0_i32_0 : i32, i32
  }
  func.func @transform_2(%arg0: i32) -> (i32, i32) {
    %c0_i32 = arith.constant 0 : i32
    %c0_i32_0 = arith.constant 0 : i32
    %c0_i32_1 = arith.constant 0 : i32
    return %c0_i32, %c0_i32_0 : i32, i32
  }
  func.func @transform_3(%arg0: i32) -> (i32, i32) {
    %c0_i32 = arith.constant 0 : i32
    %c0_i32_0 = arith.constant 0 : i32
    %c0_i32_1 = arith.constant 0 : i32
    return %c0_i32, %c0_i32_0 : i32, i32
  }
  func.func @transform_4(%arg0: i32) -> (i32, i32) {
    %c0_i32 = arith.constant 0 : i32
    %c0_i32_0 = arith.constant 0 : i32
    %c0_i32_1 = arith.constant 0 : i32
    return %c0_i32, %c0_i32_0 : i32, i32
  }
  func.func @transform_5(%arg0: i32) -> (i32, i32) {
    %c0_i32 = arith.constant 0 : i32
    %c0_i32_0 = arith.constant 0 : i32
    %c0_i32_1 = arith.constant 0 : i32
    return %c0_i32, %c0_i32_0 : i32, i32
  }
  func.func @transform_6(%arg0: i32) -> (i32, i32, i32) {
    %c0_i32 = arith.constant 0 : i32
    %c0_i32_0 = arith.constant 0 : i32
    %c0_i32_1 = arith.constant 0 : i32
    return %arg0, %c0_i32, %c0_i32_0 : i32, i32, i32
  }
}

</mosaic_0001>

<bundles_post_ra>
// kernel: squeeze.1
= control target key start
LH: loop header
LB: loop body
LE: loop exit
PB: predicated region body
PF: predicated region fallthrough
CT: control target
= control target key end

     0   :  { %s80_s10 = smov 108   ;;  %vm11_vm0 = vcmask 162816   ;;  %vm53_vm1 = vcmask 982016   ;;  %s81_s13 = smov 68   ;;  %vm57_vm2 = vcmask 64512   ;;  %vm60_vm3 = vcmask 162880   ;;  %s136_s0 = inlined_call_operand.vmem [shape: f32[4,160], index: 0, kind: input, shape index: {}]   ;;  %s137_s1 = inlined_call_operand.vmem [shape: f32[32,20,1], index: 1, kind: output, shape index: {}]  }
   0x1   :  { %v63_v0 = vld [vmem:[%s136_s0 + $0x4] sm:$0xf]  ;;  %v8_v1 = vld [vmem:[%s136_s0] sm:$0xf]  ;;  %s79_s0 = smov 116   ;;  %s82_s14 = smov 88  }
   0x2   :  { %7 = vst [vmem:[#allocation0 + $0x8] sm:$0xf] %v63_v0  ;;  %9 = vst [vmem:[#allocation0] sm:$0xf] %v8_v1  ;;  %s83_s15 = smov 8   ;;  %s84_s16 = smov 48  }
   0x3   :  { %s85_s17 = smov 28  }
   0x9   :  { %v14_v2 = vld [vmem:[#allocation0 + $0x8] sm:$0xf]   ;;  %v20_v3 = vld [vmem:[#allocation0] sm:$0xf]  }
   0xa   :  { %15 = vrot.lane.b32.xlu0 %v14_v2, %s79_s0  ;;  %21 = vrot.lane.b32.xlu1 %v20_v3, %s80_s10  ;;  %v32_v4 = vld [vmem:[#allocation0] sm:$0xf]   ;;  %v52_v8 = vld [vmem:[#allocation0 + $0x8] sm:$0xf]  }
   0xb   :  { %v26_v5 = vld [vmem:[#allocation0] sm:$0xf]  }
   0xc   :  { %v10_v6 = vld [vmem:[#allocation0] sm:$0xf]  }
   0xd   :  { %v50_v7 = vld [vmem:[#allocation0] sm:$0xf]   ;;  %12 = vst.msk [vmem:[%s137_s1] ss:$8 sm:$0xf] %vm11_vm0, %v10_v6  }
   0xe   :  { %33 = vrot.lane.b32.xlu0 %v32_v4, %s81_s13  ;;  %27 = vrot.lane.b32.xlu1 %v26_v5, %s82_s14  ;;  %v54_v9 = vsel %vm53_vm1, %v52_v8, %v50_v7  ;;  %v38_v10 = vld [vmem:[#allocation0] sm:$0xf]  }
   0xf   :  { %v44_v11 = vld [vmem:[#allocation0] sm:$0xf]  }
  0x12   :  { %55 = vrot.lane.b32.xlu0 %v54_v9, %s83_s15  ;;  %39 = vrot.lane.b32.xlu1 %v38_v10, %s84_s16 }
  0x16   :  { %45 = vrot.lane.b32.xlu0 %v44_v11, %s85_s17 }
  0x7c   :  { %v16_v12 = vpop.permute.xlu0 %15   ;;  %v22_v13 = vpop.permute.xlu1 %21  }
  0x7d   :  { %64 = vst.msk [vmem:[%s137_s1 + $0x7] ss:$8 sm:$0xf] %vm11_vm0, %v16_v12   ;;  %65 = vst.msk [vmem:[%s137_s1 + $0x1] ss:$8 sm:$0xf] %vm11_vm0, %v22_v13  }
  0x80   :  { %v34_v14 = vpop.permute.xlu0 %33   ;;  %v28_v15 = vpop.permute.xlu1 %27  }
  0x81   :  { %67 = vst.msk [vmem:[%s137_s1 + $0x3] ss:$8 sm:$0xf] %vm11_vm0, %v34_v14   ;;  %66 = vst.msk [vmem:[%s137_s1 + $0x2] ss:$8 sm:$0xf] %vm11_vm0, %v28_v15  }
  0x84   :  { %v56_v16 = vpop.permute.xlu0 %55   ;;  %v40_v17 = vpop.permute.xlu1 %39  }
  0x85   :  { %70 = vst.msk [vmem:[%s137_s1 + $0x6] ss:$8 sm:$0xf] %vm57_vm2, %v56_v16  }
  0x86   :  { %68 = vst.msk [vmem:[%s137_s1 + $0x4] ss:$8 sm:$0xf] %vm11_vm0, %v40_v17  }
  0x87   :  { %71 = vst.msk [vmem:[%s137_s1 + $0x6] ss:$8 sm:$0xf] %vm60_vm3, %v56_v16  }
  0x88   :  { %v46_v18 = vpop.permute.xlu0 %45  }
  0x89   :  { %69 = vst.msk [vmem:[%s137_s1 + $0x5] ss:$8 sm:$0xf] %vm11_vm0, %v46_v18  }

// kernel: gat_forward_batched.1
= control target key start
LH: loop header
LB: loop body
LE: loop exit
PB: predicated region body
PF: predicated region fallthrough
CT: control target
= control target key end

     0   :  { %s2703_s21 = smov 0   ;;  %s3423_s0 = inlined_call_operand.vmem [shape: f32[4,128,48], index: 0, kind: input, shape index: {}]   ;;  %s3424_s1 = inlined_call_operand.vmem [shape: f32[128,128], index: 1, kind: input, shape index: {}]   ;;  %s3425_s2 = inlined_call_operand.vmem [shape: bf16[80,33], index: 2, kind: input, shape index: {}]   ;;  %s3426_s3 = inlined_call_operand.vmem [shape: f32[8,48], index: 3, kind: input, shape index: {}]   ;;  %s3427_s4 = inlined_call_operand.vmem [shape: bf16[128,256], index: 4, kind: input, shape index: {}]   ;;  %s3428_s5 = inlined_call_operand.vmem [shape: bf16[128,256], index: 5, kind: input, shape index: {}]   ;;  %s3429_s6 = inlined_call_operand.vmem [shape: f32[4,1,256], index: 6, kind: output, shape index: {}]  }
   0x1 LB: > { %s2071_s22 = sadd.s32 4294967295, %s2661_s21   ;;  %p2075_p0 = scmp.ge.s32.totalorder %s2661_s21, 1  ;;  %s2661_s21 = sphi %s2703_s21, %s16_s21  }
   0x2   : > { %p212_p1 = scmp.lt.s32.totalorder %s2661_s21, 5 }
   0x4   : > { %p213_p2 = pnand %p2075_p0, %p212_p1 }
   0x5   : > { %v2417_v0 = vld [vmem:[%s3425_s2] sm:$0xff] (!%p213_p2)   ;;  %p241_p3 = scmp.lt.s32.totalorder (!%p213_p2), %s2071_s22, 3  ;;  %v2418_v1 = vld [vmem:[%s3425_s2 + $0x8] sm:$0xff] (!%p213_p2)   ;;  %v2419_v2 = vld [vmem:[%s3425_s2 + $0x10] sm:$0xff] (!%p213_p2)   ;;  %v2663_v3 = vmov (!%p213_p2), 0.0   ;;  %vm2664_vm0 = vmmov (!%p213_p2), 0  }
   0x6   : > { %216 = sbr.rel (%p213_p2) target bundleno = 2385 (0x951), region = 44  ;;  %2234 = vmatprep.subr.bf16.mxu0 (!%p213_p2), %v2417_v0  ;;  %2256 = vmatprep.subr.bf16.mxu1 (!%p213_p2), %v2663_v3  ;;  %v2665_v4 = vmov (!%p213_p2), 32   ;;  %vm321_vm1 = vcmask (!%p213_p2), 392192   ;;  %v2773_v37 = vld [vmem:[%s3426_s3] sm:$0xff] (!%p213_p2) }
   0x7   : > { %2235 = vmatpush3.bf16.msra.mxu0 (!%p213_p2), %v2417_v0  ;;  %2272 = vmatprep.mubr.msk.bf16.mxu1 (!%p213_p2), %vm2664_vm0, %v2663_v3  ;;  %v2777_v38 = vpack.c.bf16 (!%p213_p2), %v2773_v37, %v2773_v37 }
   0x8   : > { %2236 = vmatprep.subr.bf16.mxu0 (!%p213_p2), %v2418_v1  ;;  %2414 = vset.pattern.permute.xlu1 (!%p213_p2), %v2665_v4 }
   0x9   : > { %2413 = vset.pattern.permute.xlu0 (!%p213_p2), %v2665_v4  ;;  %v566_v4 = vlaneseq (!%p213_p2) }
   0xb   : > { %2237 = vmatpush3.bf16.msra.mxu0 (!%p213_p2), %v2418_v1 }
   0xc   : > { %2238 = vmatprep.subr.bf16.mxu0 (!%p213_p2), %v2419_v2 }
   0xd   : > { %s3431_s22 = smov (!%p241_p3, %s2071_s22), 3 }
   0xe   : > { %s2153_s29 = sshll.u32 %s3431_s22, 7  ;;  %s2078_s13 = sshll.u32 %s3431_s22, 1 }
   0xf   : > { %s2727_s8 = scalar_lea.vmem %s3423_s0, %s2153_s29  ;;  %2239 = vmatpush3.bf16.msra.mxu0 %v2419_v2  ;;  %s249_s16 = scalar_lea.vmem %s3429_s6, %s2078_s13 }
  0x10   : > { %v251_v5 = vld [vmem:[%s2727_s8] sm:$0xff]  ;;  %v252_v6 = vld [vmem:[%s2727_s8 + $0x8] sm:$0xff]  ;;  %v253_v8 = vld [vmem:[%s2727_s8 + $0x10] sm:$0xff] }
  0x11   : > { %v267_v7 = vpack.c.bf16 %v252_v6, %v251_v5  ;;  %v254_v9 = vld [vmem:[%s2727_s8 + $0x18] sm:$0xff]  ;;  %v255_v10 = vld [vmem:[%s2727_s8 + $0x20] sm:$0xff]  ;;  %v256_v11 = vld [vmem:[%s2727_s8 + $0x28] sm:$0xff]  ;;  %v2783_v5 = vshrl.u32 %v566_v4, 7 }
  0x12   : > { %v268_v13 = vpack.c.bf16 %v254_v9, %v253_v8  ;;  %v269_v14 = vpack.c.bf16 %v256_v11, %v255_v10  ;;  %v257_v15 = vld [vmem:[%s2727_s8 + $0x30] sm:$0xff]  ;;  %v258_v16 = vld [vmem:[%s2727_s8 + $0x38] sm:$0xff]  ;;  %v259_v17 = vld [vmem:[%s2727_s8 + $0x40] sm:$0xff] }
  0x13   : > { %2240 = vmatprep.mubr.msk.bf16.mxu0 %vm321_vm1, %v267_v7  ;;  %v323_v12 = vsel %vm321_vm1, %v267_v7, 0  ;;  %v260_v18 = vld [vmem:[%s2727_s8 + $0x48] sm:$0xff]  ;;  %v270_v20 = vpack.c.bf16 %v258_v16, %v257_v15  ;;  %v261_v22 = vld [vmem:[%s2727_s8 + $0x50] sm:$0xff]  ;;  %v262_v23 = vld [vmem:[%s2727_s8 + $0x58] sm:$0xff]  ;;  %v568_v6 = vsub.s32 0, %v2783_v5 }
  0x14   : > { %2257 = vmatpush3.bf16.xpose.msra.mxu1 %v323_v12  ;;  %2241 = vmatmul.mubr.msk.bf16.vlgmr.msra.gmra.mrb[0].mxu0 %vm321_vm1, %v268_v13  ;;  %v326_v19 = vsel %vm321_vm1, %v268_v13, 0  ;;  %v271_v21 = vpack.c.bf16 %v260_v18, %v259_v17  ;;  %v329_v24 = vsel %vm321_vm1, %v269_v14, 0  ;;  %v263_v25 = vld [vmem:[%s2727_s8 + $0x60] sm:$0xff]  ;;  %v264_v26 = vld [vmem:[%s2727_s8 + $0x68] sm:$0xff]  ;;  %v272_v27 = vpack.c.bf16 %v262_v23, %v261_v22  ;;  %v265_v29 = vld [vmem:[%s2727_s8 + $0x70] sm:$0xff] }
  0x15   : > { %2258 = vmatprep.subr.bf16.mxu1 %v2663_v3  ;;  %2244 = vmatprep.mubr.msk.bf16.mxu0 %vm321_vm1, %v269_v14  ;;  %v273_v28 = vpack.c.bf16 %v264_v26, %v263_v25  ;;  %v266_v30 = vld [vmem:[%s2727_s8 + $0x78] sm:$0xff]  ;;  %v332_v31 = vsel %vm321_vm1, %v270_v20, 0  ;;  %v275_v15 = vld [vmem:[%s3424_s1] sm:$0xff] }
  0x16   : > { %v274_v32 = vpack.c.bf16 %v266_v30, %v265_v29  ;;  %v335_v33 = vsel %vm321_vm1, %v271_v21, 0  ;;  %v338_v34 = vsel %vm321_vm1, %v272_v27, 0 }
  0x17   : > { %v341_v35 = vsel %vm321_vm1, %v273_v28, 0 }
  0x18   : > { %v344_v36 = vsel %vm321_vm1, %v274_v32, 0 }
  0x1c   : > { %2259 = vmatpush3.bf16.xpose.msra.mxu1 %v326_v19  ;;  %2245 = vmatmul.mubr.msk.bf16.gmra.mrb[4].mxu0 %vm321_vm1, %v270_v20 }
  0x1d   : > { %2260 = vmatprep.subr.bf16.mxu1 %v2663_v3  ;;  %2248 = vmatprep.mubr.msk.bf16.mxu0 %vm321_vm1, %v271_v21  ;;  %v277_v21 = vld [vmem:[%s3424_s1 + $0x10] sm:$0xff] }
  0x24   : > { %2261 = vmatpush3.bf16.xpose.msra.mxu1 %v329_v24  ;;  %2249 = vmatmul.mubr.msk.bf16.gmra.mrb[8].mxu0 %vm321_vm1, %v272_v27  ;;  %v276_v24 = vld [vmem:[%s3424_s1 + $0x8] sm:$0xff] }
  0x25   : > { %2262 = vmatprep.subr.bf16.mxu1 %v2663_v3  ;;  %2252 = vmatprep.mubr.msk.bf16.mxu0 %vm321_vm1, %v273_v28 }
  0x2c   : > { %2263 = vmatpush3.bf16.xpose.msra.mxu1 %v332_v31  ;;  %2253 = vmatmul.mubr.msk.bf16.gmra.mrb[12].mxu0 %vm321_vm1, %v274_v32 }
  0x2d   : > { %2264 = vmatprep.subr.bf16.mxu1 %v2663_v3 }
  0x34   : > { %2265 = vmatpush3.bf16.xpose.msra.mxu1 %v335_v33 }
  0x35   : > { %2266 = vmatprep.subr.bf16.mxu1 %v2663_v3 }
  0x3c   : > { %2267 = vmatpush3.bf16.xpose.msra.mxu1 %v338_v34  ;;  %v279_v34 = vld [vmem:[%s3424_s1 + $0x20] sm:$0xff] }
  0x3d   : > { %2268 = vmatprep.subr.bf16.mxu1 %v2663_v3 }
  0x44   : > { %2269 = vmatpush3.bf16.xpose.msra.mxu1 %v341_v35  ;;  %v278_v35 = vld [vmem:[%s3424_s1 + $0x18] sm:$0xff] }
  0x45   : > { %2270 = vmatprep.subr.bf16.mxu1 %v2663_v3 }
  0x4c   : > { %2271 = vmatpush3.bf16.xpose.msra.mxu1 %v344_v36 }
  0x53   : > { %2273 = vmatmul.mubr.msk.bf16.vlgmr.msra.gmra.mrb[0].mxu1 %vm321_vm1, %v2777_v38 }
  0xe7   : > { %v2242_v39 = vpop.f32.mrb[0].mxu0 }
  0xe8   : > { %498 = vperm.xlu1 %2414, %v2242_v39   ;;  %v380_v40 = vpop.f32.mrb[1].mxu0 }
  0xe9   : > { %488 = vperm.xlu0 %2413, %v380_v40   ;;  %v2243_v41 = vpop.f32.mrb[2].mxu0 }
  0xea   : > { %v803_v42 = vpack.c.bf16 %v2243_v41, %v2242_v39  ;;  %v383_v43 = vpop.f32.mrb[3].mxu0 }
  0xeb   : > { %v802_v44 = vpack.c.bf16 %v383_v43, %v380_v40 }
  0xec   : > { %503 = vperm.xlu1 %2414, %v2243_v41  }
  0xed   : > { %493 = vperm.xlu0 %2413, %v383_v43   ;;  %2276 = vmatprep.subr.bf16.mxu0 %v802_v44 }
  0xee   : > { %2277 = vmatpush3.bf16.msra.mxu0 %v802_v44 }
  0xef   : > { %v2246_v45 = vpop.f32.mrb[4].mxu0  ;;  %2278 = vmatprep.subr.bf16.mxu0 %v803_v42 }
  0xf0   : > { %v396_v46 = vpop.f32.mrb[5].mxu0 }
  0xf1   : > { %508 = vperm.xlu0 %2413, %v396_v46   ;;  %v2247_v47 = vpop.f32.mrb[6].mxu0 }
  0xf2   : > { %v805_v48 = vpack.c.bf16 %v2247_v47, %v2246_v45  ;;  %v399_v49 = vpop.f32.mrb[7].mxu0  ;;  %2279 = vmatpush3.bf16.msra.mxu0 %v803_v42 }
  0xf3   : > { %v804_v50 = vpack.c.bf16 %v399_v49, %v396_v46  ;;  %513 = vperm.xlu1 %2414, %v399_v49   ;;  %v280_v49 = vld [vmem:[%s3424_s1 + $0x28] sm:$0xff] }
  0xf5   : > { %518 = vperm.xlu0 %2413, %v2246_v45   ;;  %2280 = vmatprep.subr.bf16.mxu0 %v804_v50 }
  0xf6   : > { %2281 = vmatpush3.bf16.msra.mxu0 %v804_v50 }
  0xf7   : > { %523 = vperm.xlu1 %2414, %v2247_v47   ;;  %v2250_v51 = vpop.f32.mrb[8].mxu0  ;;  %2282 = vmatprep.subr.bf16.mxu0 %v805_v48 }
  0xf8   : > { %v412_v52 = vpop.f32.mrb[9].mxu0 }
  0xf9   : > { %528 = vperm.xlu0 %2413, %v412_v52   ;;  %v2251_v53 = vpop.f32.mrb[10].mxu0 }
  0xfa   : > { %v807_v54 = vpack.c.bf16 %v2251_v53, %v2250_v51  ;;  %v415_v55 = vpop.f32.mrb[11].mxu0  ;;  %2283 = vmatpush3.bf16.msra.mxu0 %v805_v48  ;;  %v281_v48 = vld [vmem:[%s3424_s1 + $0x30] sm:$0xff] }
  0xfb   : > { %v806_v56 = vpack.c.bf16 %v415_v55, %v412_v52  ;;  %533 = vperm.xlu1 %2414, %v415_v55  }
  0xfd   : > { %538 = vperm.xlu0 %2413, %v2250_v51   ;;  %2284 = vmatprep.subr.bf16.mxu0 %v806_v56 }
  0xfe   : > { %2285 = vmatpush3.bf16.msra.mxu0 %v806_v56 }
  0xff   : > { %543 = vperm.xlu1 %2414, %v2251_v53   ;;  %v2254_v57 = vpop.f32.mrb[12].mxu0  ;;  %2286 = vmatprep.subr.bf16.mxu0 %v807_v54 }
 0x100   : > { %v428_v58 = vpop.f32.mrb[13].mxu0 }
 0x101   : > { %558 = vperm.xlu0 %2413, %v2254_v57   ;;  %v2255_v59 = vpop.f32.mrb[14].mxu0 }
 0x102   : > { %v809_v60 = vpack.c.bf16 %v2255_v59, %v2254_v57  ;;  %v431_v61 = vpop.f32.mrb[15].mxu0  ;;  %2287 = vmatpush3.bf16.msra.mxu0 %v807_v54 }
 0x103   : > { %v808_v62 = vpack.c.bf16 %v431_v61, %v428_v58  ;;  %553 = vperm.xlu1 %2414, %v431_v61   ;;  %v282_v61 = vld [vmem:[%s3424_s1 + $0x38] sm:$0xff] }
 0x105   : > { %548 = vperm.xlu0 %2413, %v428_v58   ;;  %2288 = vmatprep.subr.bf16.mxu0 %v808_v62 }
 0x106   : > { %2289 = vmatpush3.bf16.msra.mxu0 %v808_v62 }
 0x107   : > { %563 = vperm.xlu1 %2414, %v2255_v59   ;;  %2290 = vmatprep.subr.bf16.mxu0 %v809_v60 }
 0x10a   : > { %2291 = vmatpush3.bf16.msra.mxu0 %v809_v60  ;;  %v283_v60 = vld [vmem:[%s3424_s1 + $0x40] sm:$0xff] }
 0x10b   : > { %2328 = vmatprep.subr.bf16.mxu0 %v2663_v3 }
 0x126   : > { %v480_v63 = vpop.f32.mrb[0].mxu1 }
 0x127   : > { %v2274_v0 = vpop.f32.mrb[1].mxu1  ;;  %v2788_v7 = vrot.slane %v480_v63, %v568_v6 }
 0x128   : > { %v483_v1 = vpop.f32.mrb[2].mxu1 }
 0x129   : > { %v2275_v2 = vpop.f32.mrb[3].mxu1 }
 0x167   : > { %v499_v8 = vpop.permute.xlu1 %498 }
 0x168   : > { %v572_v9 = vadd.f32 %v2788_v7, %v499_v8  ;;  %v489_v10 = vpop.permute.xlu0 %488 }
 0x169   : > { %v570_v11 = vadd.f32 %v2788_v7, %v489_v10 }
 0x16a   : > { %v604_v12 = vmul.f32 0.2, %v572_v9  ;;  %vm588_vm3 = vcmp.gt.f32.partialorder %v572_v9, 0.0 }
 0x16b   : > { %v602_v13 = vmul.f32 0.2, %v570_v11  ;;  %v504_v14 = vpop.permute.xlu1 %503  ;;  %vm586_vm2 = vcmp.gt.f32.partialorder %v570_v11, 0.0 }
 0x16c   : > { %v573_v16 = vadd.f32 %v2788_v7, %v504_v14  ;;  %v494_v17 = vpop.permute.xlu0 %493  ;;  %v620_v25 = vsel %vm588_vm3, %v572_v9, %v604_v12  ;;  %v284_v14 = vld [vmem:[%s3424_s1 + $0x48] sm:$0xff]  ;;  %vm1027_vm3 = vcmask 261120  }
 0x16d   : > { %v571_v18 = vadd.f32 %v2788_v7, %v494_v17  ;;  %v618_v19 = vsel %vm586_vm2, %v570_v11, %v602_v13  ;;  %v2809_v31 = vadd.f32 %v620_v25, %v277_v21  ;;  %v285_v13 = vld [vmem:[%s3424_s1 + $0x50] sm:$0xff]  ;;  %v286_v25 = vld [vmem:[%s3424_s1 + $0x58] sm:$0xff] }
 0x16e   : > { %v2797_v20 = vadd.f32 %v618_v19, %v275_v15  ;;  %v605_v22 = vmul.f32 0.2, %v573_v16  ;;  %vm589_vm5 = vcmp.gt.f32.partialorder %v573_v16, 0.0 }
 0x16f   : > { %v603_v23 = vmul.f32 0.2, %v571_v18  ;;  %vm587_vm4 = vcmp.gt.f32.partialorder %v571_v18, 0.0 }
 0x170   : > { %v509_v26 = vpop.permute.xlu0 %508  ;;  %650 = vmax.xlane.f32.xlu0 %v2797_v20  ;;  %v621_v36 = vsel %vm589_vm5, %v573_v16, %v605_v22 }
 0x171   : > { %v574_v27 = vadd.f32 %v2788_v7, %v509_v26  ;;  %v619_v28 = vsel %vm587_vm4, %v571_v18, %v603_v23  ;;  %v2823_v45 = vadd.f32 %v621_v36, %v278_v35 }
 0x172   : > { %v514_v29 = vpop.permute.xlu1 %513  ;;  %v2807_v30 = vadd.f32 %v619_v28, %v276_v24 }
 0x173   : > { %v606_v32 = vmul.f32 0.2, %v574_v27  ;;  %v575_v33 = vadd.f32 %v2788_v7, %v514_v29  ;;  %vm590_vm6 = vcmp.gt.f32.partialorder %v574_v27, 0.0 }
 0x174   : > { %v519_v39 = vpop.permute.xlu0 %518  ;;  %652 = vmax.xlane.f32.xlu1 %v2807_v30  ;;  %654 = vmax.xlane.f32.xlu0 %v2809_v31 }
 0x175   : > { %v607_v40 = vmul.f32 0.2, %v575_v33  ;;  %v576_v41 = vadd.f32 %v2788_v7, %v519_v39  ;;  %v622_v42 = vsel %vm590_vm6, %v574_v27, %v606_v32  ;;  %vm591_vm7 = vcmp.gt.f32.partialorder %v575_v33, 0.0  ;;  %v287_v39 = vld [vmem:[%s3424_s1 + $0x60] sm:$0xff] }
 0x176   : > { %v524_v43 = vpop.permute.xlu1 %523  ;;  %v2821_v44 = vadd.f32 %v622_v42, %v279_v34 }
 0x177   : > { %v608_v46 = vmul.f32 0.2, %v576_v41  ;;  %v577_v47 = vadd.f32 %v2788_v7, %v524_v43  ;;  %vm592_vm8 = vcmp.gt.f32.partialorder %v576_v41, 0.0  ;;  %v623_v50 = vsel %vm591_vm7, %v575_v33, %v607_v40  ;;  %v288_v40 = vld [vmem:[%s3424_s1 + $0x68] sm:$0xff] }
 0x178   : > { %v529_v51 = vpop.permute.xlu0 %528  ;;  %658 = vmax.xlane.f32.xlu1 %v2821_v44  ;;  %656 = vmax.xlane.f32.xlu0 %v2823_v45  ;;  %v2837_v57 = vadd.f32 %v623_v50, %v280_v49  ;;  %v290_v49 = vld [vmem:[%s3424_s1 + $0x78] sm:$0xff] }
 0x179   : > { %v609_v52 = vmul.f32 0.2, %v577_v47  ;;  %v578_v53 = vadd.f32 %v2788_v7, %v529_v51  ;;  %v624_v54 = vsel %vm592_vm8, %v576_v41, %v608_v46  ;;  %vm593_vm9 = vcmp.gt.f32.partialorder %v577_v47, 0.0 }
 0x17a   : > { %v534_v55 = vpop.permute.xlu1 %533  ;;  %v2835_v56 = vadd.f32 %v624_v54, %v281_v48 }
 0x17b   : > { %v610_v58 = vmul.f32 0.2, %v578_v53  ;;  %v579_v59 = vadd.f32 %v2788_v7, %v534_v55  ;;  %vm594_vm10 = vcmp.gt.f32.partialorder %v578_v53, 0.0  ;;  %v625_v62 = vsel %vm593_vm9, %v577_v47, %v609_v52 }
 0x17c   : > { %v539_v63 = vpop.permute.xlu0 %538  ;;  %662 = vmax.xlane.f32.xlu1 %v2835_v56  ;;  %660 = vmax.xlane.f32.xlu0 %v2837_v57  ;;  %v2851_v10 = vadd.f32 %v625_v62, %v282_v61 }
 0x17d   : > { %v611_v0 = vmul.f32 0.2, %v579_v59  ;;  %v580_v1 = vadd.f32 %v2788_v7, %v539_v63  ;;  %v626_v2 = vsel %vm594_vm10, %v578_v53, %v610_v58  ;;  %vm595_vm11 = vcmp.gt.f32.partialorder %v579_v59, 0.0 }
 0x17e   : > { %v544_v8 = vpop.permute.xlu1 %543  ;;  %v2849_v9 = vadd.f32 %v626_v2, %v283_v60 }
 0x17f   : > { %v612_v11 = vmul.f32 0.2, %v580_v1  ;;  %v581_v12 = vadd.f32 %v2788_v7, %v544_v8  ;;  %vm596_vm12 = vcmp.gt.f32.partialorder %v580_v1, 0.0  ;;  %v627_v15 = vsel %vm595_vm11, %v579_v59, %v611_v0 }
 0x180   : > { %v559_v16 = vpop.permute.xlu0 %558  ;;  %666 = vmax.xlane.f32.xlu1 %v2849_v9  ;;  %664 = vmax.xlane.f32.xlu0 %v2851_v10  ;;  %v2865_v23 = vadd.f32 %v627_v15, %v284_v14 }
 0x181   : > { %v613_v17 = vmul.f32 0.2, %v581_v12  ;;  %v628_v18 = vsel %vm596_vm12, %v580_v1, %v612_v11  ;;  %vm597_vm13 = vcmp.gt.f32.partialorder %v581_v12, 0.0  ;;  %v584_v19 = vadd.f32 %v2788_v7, %v559_v16 }
 0x182   : > { %v554_v21 = vpop.permute.xlu1 %553  ;;  %v2863_v22 = vadd.f32 %v628_v18, %v285_v13 }
 0x183   : > { %v583_v24 = vadd.f32 %v2788_v7, %v554_v21  ;;  %v629_v26 = vsel %vm597_vm13, %v581_v12, %v613_v17  ;;  %v616_v32 = vmul.f32 0.2, %v584_v19  ;;  %vm600_vm1 = vcmp.gt.f32.partialorder %v584_v19, 0.0 }
 0x184   : > { %v549_v27 = vpop.permute.xlu0 %548  ;;  %670 = vmax.xlane.f32.xlu1 %v2863_v22  ;;  %668 = vmax.xlane.f32.xlu0 %v2865_v23  ;;  %v2874_v34 = vadd.f32 %v629_v26, %v286_v25 }
 0x185   : > { %v615_v28 = vmul.f32 0.2, %v583_v24  ;;  %v582_v29 = vadd.f32 %v2788_v7, %v549_v27  ;;  %vm599_vm14 = vcmp.gt.f32.partialorder %v583_v24, 0.0  ;;  %v632_v48 = vsel %vm600_vm1, %v584_v19, %v616_v32 }
 0x186   : > { %v564_v33 = vpop.permute.xlu1 %563 }
 0x187   : > { %v614_v35 = vmul.f32 0.2, %v582_v29  ;;  %v585_v36 = vadd.f32 %v2788_v7, %v564_v33  ;;  %vm598_vm15 = vcmp.gt.f32.partialorder %v582_v29, 0.0  ;;  %v631_v41 = vsel %vm599_vm14, %v583_v24, %v615_v28  ;;  %v289_v7 = vld [vmem:[%s3424_s1 + $0x70] sm:$0xff] }
 0x188   : > { %672 = vmax.xlane.f32.xlu0 %v2874_v34  ;;  %v2886_v47 = vadd.f32 %v631_v41, %v288_v40  ;;  %v2896_v51 = vadd.f32 %v632_v48, %v289_v7 }
 0x189   : > { %v617_v42 = vmul.f32 0.2, %v585_v36  ;;  %v630_v43 = vsel %vm598_vm15, %v582_v29, %v614_v35  ;;  %vm601_vm2 = vcmp.gt.f32.partialorder %v585_v36, 0.0 }
 0x18a   : > { %v2884_v46 = vadd.f32 %v630_v43, %v287_v39 }
 0x18b   : > { %v633_v50 = vsel %vm601_vm2, %v585_v36, %v617_v42 }
 0x18c   : > { %674 = vmax.xlane.f32.xlu1 %v2884_v46  ;;  %676 = vmax.xlane.f32.xlu0 %v2886_v47  ;;  %v2898_v52 = vadd.f32 %v633_v50, %v290_v49 }
 0x190   : > { %678 = vmax.xlane.f32.xlu1 %v2896_v51  ;;  %680 = vmax.xlane.f32.xlu0 %v2898_v52 }
 0x1fd   : > { %v651_v53 = vpop.xlane.xlu0 %650 }
 0x1fe   : > { %v682_v54 = vsub.f32 %v2797_v20, %v651_v53 }
 0x200   : > { %v698_v55 = vmul.f32 1.442695, %v682_v54 }
 0x201   : > { %v653_v58 = vpop.xlane.xlu1 %652  ;;  %v655_v59 = vpop.xlane.xlu0 %654 }
 0x202   : > { %2470 = vpow2.f32 %v698_v55  ;;  %v683_v60 = vsub.f32 %v2807_v30, %v653_v58  ;;  %v684_v61 = vsub.f32 %v2809_v31, %v655_v59 }
 0x204   : > { %v700_v62 = vmul.f32 1.442695, %v683_v60  ;;  %v702_v63 = vmul.f32 1.442695, %v684_v61 }
 0x205   : > { %v659_v0 = vpop.xlane.xlu1 %658  ;;  %v657_v1 = vpop.xlane.xlu0 %656 }
 0x206   : > { %2472 = vpow2.f32 %v700_v62  ;;  %v686_v2 = vsub.f32 %v2821_v44, %v659_v0  ;;  %v685_v8 = vsub.f32 %v2823_v45, %v657_v1 }
 0x207   : > { %2474 = vpow2.f32 %v702_v63 }
 0x208   : > { %v706_v11 = vmul.f32 1.442695, %v686_v2  ;;  %v704_v20 = vmul.f32 1.442695, %v685_v8 }
 0x209   : > { %v663_v12 = vpop.xlane.xlu1 %662  ;;  %v661_v13 = vpop.xlane.xlu0 %660 }
 0x20a   : > { %2476 = vpow2.f32 %v706_v11  ;;  %v688_v14 = vsub.f32 %v2835_v56, %v663_v12  ;;  %v687_v30 = vsub.f32 %v2837_v57, %v661_v13 }
 0x20b   : > { %2478 = vpow2.f32 %v704_v20 }
 0x20c   : > { %v2909_v31 = vpop.eup %2470  ;;  %v710_v15 = vmul.f32 1.442695, %v688_v14  ;;  %v708_v16 = vmul.f32 1.442695, %v687_v30 }
 0x20d   : > { %v667_v17 = vpop.xlane.xlu1 %666  ;;  %730 = vadd.xlane.f32.xlu1 %v2909_v31  ;;  %v665_v44 = vpop.xlane.xlu0 %664 }
 0x20e   : > { %2480 = vpow2.f32 %v710_v15  ;;  %v690_v45 = vsub.f32 %v2849_v9, %v667_v17  ;;  %v689_v18 = vsub.f32 %v2851_v10, %v665_v44 }
 0x20f   : > { %2482 = vpow2.f32 %v708_v16 }
 0x210   : > { %v2914_v19 = vpop.eup %2472  ;;  %v714_v56 = vmul.f32 1.442695, %v690_v45  ;;  %v712_v21 = vmul.f32 1.442695, %v689_v18 }
 0x211   : > { %v2916_v57 = vpop.eup %2474  ;;  %v671_v24 = vpop.xlane.xlu1 %670  ;;  %732 = vadd.xlane.f32.xlu0 %v2914_v19 }
 0x212   : > { %v669_v25 = vpop.xlane.xlu0 %668  ;;  %2484 = vpow2.f32 %v714_v56  ;;  %v692_v26 = vsub.f32 %v2863_v22, %v671_v24  ;;  %734 = vadd.xlane.f32.xlu1 %v2916_v57 }
 0x213   : > { %v691_v9 = vsub.f32 %v2865_v23, %v669_v25  ;;  %2486 = vpow2.f32 %v712_v21 }
 0x214   : > { %v2922_v10 = vpop.eup %2476  ;;  %v718_v27 = vmul.f32 1.442695, %v692_v26 }
 0x215   : > { %v716_v28 = vmul.f32 1.442695, %v691_v9  ;;  %v2924_v29 = vpop.eup %2478 }
 0x216   : > { %v673_v32 = vpop.xlane.xlu0 %672  ;;  %2488 = vpow2.f32 %v718_v27  ;;  %738 = vadd.xlane.f32.xlu1 %v2922_v10  ;;  %736 = vadd.xlane.f32.xlu0 %v2924_v29 }
 0x217   : > { %v693_v33 = vsub.f32 %v2874_v34, %v673_v32  ;;  %2490 = vpow2.f32 %v716_v28 }
 0x218   : > { %v2929_v22 = vpop.eup %2480 }
 0x219   : > { %v720_v35 = vmul.f32 1.442695, %v693_v33  ;;  %v2931_v23 = vpop.eup %2482  ;;  %v675_v36 = vpop.xlane.xlu1 %674 }
 0x21a   : > { %v677_v39 = vpop.xlane.xlu0 %676  ;;  %v694_v40 = vsub.f32 %v2884_v46, %v675_v36  ;;  %742 = vadd.xlane.f32.xlu1 %v2929_v22  ;;  %740 = vadd.xlane.f32.xlu0 %v2931_v23 }
 0x21b   : > { %2492 = vpow2.f32 %v720_v35  ;;  %v695_v41 = vsub.f32 %v2886_v47, %v677_v39 }
 0x21c   : > { %v2937_v42 = vpop.eup %2484  ;;  %v722_v34 = vmul.f32 1.442695, %v694_v40 }
 0x21d   : > { %v724_v43 = vmul.f32 1.442695, %v695_v41  ;;  %v2939_v7 = vpop.eup %2486  ;;  %v679_v48 = vpop.xlane.xlu1 %678 }
 0x21e   : > { %v681_v49 = vpop.xlane.xlu0 %680  ;;  %2494 = vpow2.f32 %v722_v34  ;;  %v696_v50 = vsub.f32 %v2896_v51, %v679_v48  ;;  %746 = vadd.xlane.f32.xlu1 %v2937_v42  ;;  %744 = vadd.xlane.f32.xlu0 %v2939_v7 }
 0x21f   : > { %v697_v46 = vsub.f32 %v2898_v52, %v681_v49  ;;  %2496 = vpow2.f32 %v724_v43 }
 0x220   : > { %v2945_v53 = vpop.eup %2488  ;;  %v726_v47 = vmul.f32 1.442695, %v696_v50 }
 0x221   : > { %v728_v54 = vmul.f32 1.442695, %v697_v46  ;;  %v2947_v55 = vpop.eup %2490 }
 0x222   : > { %2498 = vpow2.f32 %v726_v47  ;;  %750 = vadd.xlane.f32.xlu1 %v2945_v53  ;;  %748 = vadd.xlane.f32.xlu0 %v2947_v55 }
 0x223   : > { %2500 = vpow2.f32 %v728_v54 }
 0x225   : > { %v2951_v51 = vpop.eup %2492 }
 0x226   : > { %752 = vadd.xlane.f32.xlu0 %v2951_v51 }
 0x228   : > { %v2954_v58 = vpop.eup %2494 }
 0x229   : > { %v2956_v52 = vpop.eup %2496  ;;  %754 = vadd.xlane.f32.xlu1 %v2954_v58 }
 0x22a   : > { %756 = vadd.xlane.f32.xlu0 %v2956_v52 }
 0x22c   : > { %v2960_v59 = vpop.eup %2498 }
 0x22d   : > { %v2962_v60 = vpop.eup %2500  ;;  %758 = vadd.xlane.f32.xlu1 %v2960_v59 }
 0x22e   : > { %760 = vadd.xlane.f32.xlu0 %v2962_v60 }
 0x29a   : > { %v731_v61 = vpop.xlane.xlu1 %730 }
 0x29b   : > { %2502 = vrcp.f32 %v731_v61 }
 0x29e   : > { %v733_v62 = vpop.xlane.xlu0 %732 }
 0x29f   : > { %v735_v63 = vpop.xlane.xlu1 %734  ;;  %2504 = vrcp.f32 %v733_v62 }
 0x2a0   : > { %2506 = vrcp.f32 %v735_v63 }
 0x2a3   : > { %v739_v0 = vpop.xlane.xlu1 %738  ;;  %v737_v1 = vpop.xlane.xlu0 %736 }
 0x2a4   : > { %2508 = vrcp.f32 %v737_v1 }
 0x2a5   : > { %v2503_v2 = vpop.eup %2502  ;;  %2510 = vrcp.f32 %v739_v0 }
 0x2a6   : > { %v763_v12 = vmul.f32 %v2503_v2, %v2909_v31 }
 0x2a7   : > { %v743_v8 = vpop.xlane.xlu1 %742  ;;  %v741_v11 = vpop.xlane.xlu0 %740 }
 0x2a8   : > { %2512 = vrcp.f32 %v741_v11 }
 0x2a9   : > { %v2505_v20 = vpop.eup %2504  ;;  %2514 = vrcp.f32 %v743_v8 }
 0x2aa   : > { %v765_v13 = vmul.f32 %v2505_v20, %v2914_v19  ;;  %v2507_v16 = vpop.eup %2506 }
 0x2ab   : > { %v747_v14 = vpop.xlane.xlu1 %746  ;;  %v745_v30 = vpop.xlane.xlu0 %744  ;;  %v767_v18 = vmul.f32 %v2507_v16, %v2916_v57 }
 0x2ac   : > { %v794_v15 = vpack.c.bf16 %v765_v13, %v763_v12  ;;  %2516 = vrcp.f32 %v745_v30 }
 0x2ad   : > { %2518 = vrcp.f32 %v747_v14 }
 0x2ae   : > { %2292 = vmatprep.mubr.bf16.mxu0 %v794_v15  ;;  %v2509_v17 = vpop.eup %2508 }
 0x2af   : > { %v751_v44 = vpop.xlane.xlu1 %750  ;;  %v749_v45 = vpop.xlane.xlu0 %748  ;;  %v769_v56 = vmul.f32 %v2509_v17, %v2924_v29 }
 0x2b0   : > { %v2511_v21 = vpop.eup %2510  ;;  %2520 = vrcp.f32 %v749_v45 }
 0x2b1   : > { %2522 = vrcp.f32 %v751_v44  ;;  %v795_v31 = vpack.c.bf16 %v769_v56, %v767_v18  ;;  %v771_v25 = vmul.f32 %v2511_v21, %v2922_v10 }
 0x2b2   : > { %v2513_v19 = vpop.eup %2512 }
 0x2b3   : > { %v753_v24 = vpop.xlane.xlu0 %752  ;;  %2293 = vmatmul.mubr.bf16.vlgmr.msra.gmra.mrb[16].mxu0 %v795_v31  ;;  %v773_v26 = vmul.f32 %v2513_v19, %v2931_v23  ;;  %v2515_v9 = vpop.eup %2514 }
 0x2b4   : > { %2524 = vrcp.f32 %v753_v24  ;;  %v775_v29 = vmul.f32 %v2515_v9, %v2929_v22 }
 0x2b5   : > { %v796_v28 = vpack.c.bf16 %v773_v26, %v771_v25 }
 0x2b6   : > { %v755_v27 = vpop.xlane.xlu1 %754  ;;  %v2517_v32 = vpop.eup %2516 }
 0x2b7   : > { %2526 = vrcp.f32 %v755_v27  ;;  %v757_v57 = vpop.xlane.xlu0 %756  ;;  %2296 = vmatprep.mubr.bf16.mxu0 %v796_v28  ;;  %v777_v33 = vmul.f32 %v2517_v32, %v2939_v7  ;;  %v2519_v35 = vpop.eup %2518 }
 0x2b8   : > { %2528 = vrcp.f32 %v757_v57  ;;  %v779_v23 = vmul.f32 %v2519_v35, %v2937_v42 }
 0x2b9   : > { %v797_v39 = vpack.c.bf16 %v777_v33, %v775_v29 }
 0x2ba   : > { %v759_v36 = vpop.xlane.xlu1 %758  ;;  %v2521_v40 = vpop.eup %2520 }
 0x2bb   : > { %2530 = vrcp.f32 %v759_v36  ;;  %v761_v10 = vpop.xlane.xlu0 %760  ;;  %v2523_v41 = vpop.eup %2522  ;;  %2297 = vmatmul.mubr.bf16.gmra.mrb[20].mxu0 %v797_v39  ;;  %v781_v34 = vmul.f32 %v2521_v40, %v2947_v55 }
 0x2bc   : > { %2532 = vrcp.f32 %v761_v10  ;;  %v783_v49 = vmul.f32 %v2523_v41, %v2945_v53 }
 0x2bd   : > { %v798_v48 = vpack.c.bf16 %v781_v34, %v779_v23 }
 0x2be   : > { %v2525_v43 = vpop.eup %2524 }
 0x2bf   : > { %v785_v22 = vmul.f32 %v2525_v43, %v2951_v51  ;;  %2300 = vmatprep.mubr.bf16.mxu0 %v798_v48  ;;  %v2420_v51 = vld [vmem:[%s3425_s2 + $0x18] sm:$0xff]  }
 0x2c0   : > { %2308 = vmatprep.subr.bf16.mxu1 %v2420_v51 }
 0x2c1   : > { %v2527_v7 = vpop.eup %2526  ;;  %v799_v50 = vpack.c.bf16 %v785_v22, %v783_v49  ;;  %2309 = vmatpush3.bf16.msra.mxu1 %v2420_v51 }
 0x2c2   : > { %v2529_v46 = vpop.eup %2528  ;;  %v787_v47 = vmul.f32 %v2527_v7, %v2954_v58  ;;  %v2421_v58 = vld [vmem:[%s3425_s2 + $0x20] sm:$0xff]  }
 0x2c3   : > { %v789_v54 = vmul.f32 %v2529_v46, %v2956_v52  ;;  %2301 = vmatmul.mubr.bf16.gmra.mrb[24].mxu0 %v799_v50  ;;  %2310 = vmatprep.subr.bf16.mxu1 %v2421_v58  ;;  %v812_v52 = vsub.s32 2, %v2783_v5 }
 0x2c5   : > { %v2531_v61 = vpop.eup %2530  ;;  %v800_v62 = vpack.c.bf16 %v789_v54, %v787_v47  ;;  %2311 = vmatpush3.bf16.msra.mxu1 %v2421_v58 }
 0x2c6   : > { %v2533_v42 = vpop.eup %2532  ;;  %v791_v55 = vmul.f32 %v2531_v61, %v2960_v59  ;;  %v2992_v59 = vrot.slane %v2773_v37, %v812_v52 }
 0x2c7   : > { %2304 = vmatprep.mubr.bf16.mxu0 %v800_v62  ;;  %v793_v63 = vmul.f32 %v2533_v42, %v2962_v60 }
 0x2c9   : > { %v801_v53 = vpack.c.bf16 %v793_v63, %v791_v55 }
 0x2cb   : > { %2305 = vmatmul.mubr.bf16.gmra.mrb[28].mxu0 %v801_v53 }
 0x2cc   : > { %2344 = vmatprep.mubr.msk.bf16.mxu0 %vm2664_vm0, %v2663_v3 }
 0x386   : > { %v2294_v60 = vpop.f32.mrb[16].mxu0 }
 0x387   : > { %v857_v0 = vadd.f32 %v2294_v60, %v2992_v59  ;;  %v848_v1 = vpop.f32.mrb[17].mxu0 }
 0x388   : > { %v2996_v2 = vadd.f32 %v848_v1, %v2992_v59  ;;  %v2295_v8 = vpop.f32.mrb[18].mxu0 }
 0x389   : > { %v929_v11 = vmin.f32 %v857_v0, 0.0  ;;  %v860_v20 = vadd.f32 %v2295_v8, %v2992_v59  ;;  %v851_v12 = vpop.f32.mrb[19].mxu0  ;;  %vm913_vm4 = vcmp.gt.f32.partialorder %v857_v0, 0.0 }
 0x38a   : > { %v927_v13 = vmin.f32 %v2996_v2, 0.0  ;;  %v852_v14 = vadd.f32 %v851_v12, %v2992_v59  ;;  %vm911_vm5 = vcmp.gt.f32.partialorder %v2996_v2, 0.0 }
 0x38b   : > { %v947_v30 = vmul.f32 1.442695, %v929_v11  ;;  %v930_v15 = vmin.f32 %v860_v20, 0.0  ;;  %vm914_vm6 = vcmp.gt.f32.partialorder %v860_v20, 0.0 }
 0x38c   : > { %v943_v37 = vmul.f32 1.442695, %v927_v13  ;;  %v928_v16 = vmin.f32 %v852_v14, 0.0  ;;  %vm912_vm7 = vcmp.gt.f32.partialorder %v852_v14, 0.0 }
 0x38d   : > { %2534 = vpow2.f32 %v947_v30  ;;  %v949_v17 = vmul.f32 1.442695, %v930_v15 }
 0x38e   : > { %2536 = vpow2.f32 %v943_v37  ;;  %v945_v44 = vmul.f32 1.442695, %v928_v16  ;;  %v2298_v45 = vpop.f32.mrb[20].mxu0 }
 0x38f   : > { %2538 = vpow2.f32 %v949_v17  ;;  %v3002_v18 = vadd.f32 %v2298_v45, %v2992_v59  ;;  %v864_v56 = vpop.f32.mrb[21].mxu0 }
 0x390   : > { %2540 = vpow2.f32 %v945_v44  ;;  %v3005_v21 = vadd.f32 %v864_v56, %v2992_v59  ;;  %v2299_v31 = vpop.f32.mrb[22].mxu0 }
 0x391   : > { %v933_v19 = vmin.f32 %v3002_v18, 0.0  ;;  %v3009_v24 = vadd.f32 %v2299_v31, %v2992_v59  ;;  %v867_v25 = vpop.f32.mrb[23].mxu0  ;;  %vm917_vm8 = vcmp.gt.f32.partialorder %v3002_v18, 0.0 }
 0x392   : > { %v931_v26 = vmin.f32 %v3005_v21, 0.0  ;;  %v3013_v9 = vadd.f32 %v867_v25, %v2992_v59  ;;  %vm915_vm9 = vcmp.gt.f32.partialorder %v3005_v21, 0.0 }
 0x393   : > { %v955_v27 = vmul.f32 1.442695, %v933_v19  ;;  %v934_v28 = vmin.f32 %v3009_v24, 0.0  ;;  %vm918_vm10 = vcmp.gt.f32.partialorder %v3009_v24, 0.0 }
 0x394   : > { %v951_v32 = vmul.f32 1.442695, %v931_v26  ;;  %v932_v57 = vmin.f32 %v3013_v9, 0.0  ;;  %vm916_vm11 = vcmp.gt.f32.partialorder %v3013_v9, 0.0 }
 0x395   : > { %2542 = vpow2.f32 %v955_v27  ;;  %v957_v29 = vmul.f32 1.442695, %v934_v28 }
 0x396   : > { %2544 = vpow2.f32 %v951_v32  ;;  %v953_v33 = vmul.f32 1.442695, %v932_v57  ;;  %v2302_v35 = vpop.f32.mrb[24].mxu0 }
 0x397   : > { %v2535_v36 = vpop.eup %2534  ;;  %2546 = vpow2.f32 %v957_v29  ;;  %v3018_v39 = vadd.f32 %v2302_v35, %v2992_v59  ;;  %v880_v40 = vpop.f32.mrb[25].mxu0 }
 0x398   : > { %v2537_v10 = vpop.eup %2536  ;;  %v2093_v41 = vadd.f32 -1.0, %v2535_v36  ;;  %2548 = vpow2.f32 %v953_v33  ;;  %v3021_v23 = vadd.f32 %v880_v40, %v2992_v59  ;;  %v2303_v34 = vpop.f32.mrb[26].mxu0 }
 0x399   : > { %v2539_v43 = vpop.eup %2538  ;;  %v2091_v48 = vadd.f32 -1.0, %v2537_v10  ;;  %v937_v49 = vmin.f32 %v3018_v39, 0.0  ;;  %v3025_v22 = vadd.f32 %v2303_v34, %v2992_v59  ;;  %v883_v7 = vpop.f32.mrb[27].mxu0  ;;  %vm921_vm12 = vcmp.gt.f32.partialorder %v3018_v39, 0.0 }
 0x39a   : > { %v2541_v50 = vpop.eup %2540  ;;  %v2094_v46 = vadd.f32 -1.0, %v2539_v43  ;;  %v935_v47 = vmin.f32 %v3021_v23, 0.0  ;;  %v993_v54 = vsel %vm913_vm4, %v857_v0, %v2093_v41  ;;  %v3031_v53 = vadd.f32 %v883_v7, %v2992_v59 }
 0x39b   : > { %v2092_v61 = vadd.f32 -1.0, %v2541_v50  ;;  %v963_v62 = vmul.f32 1.442695, %v937_v49  ;;  %v938_v63 = vmin.f32 %v3025_v22, 0.0  ;;  %v991_v51 = vsel %vm911_vm5, %v2996_v2, %v2091_v48 }
 0x39c   : > { %v994_v42 = vsel %vm914_vm6, %v860_v20, %v2094_v46  ;;  %v959_v55 = vmul.f32 1.442695, %v935_v47  ;;  %v936_v0 = vmin.f32 %v3031_v53, 0.0  ;;  %vm922_vm13 = vcmp.gt.f32.partialorder %v3025_v22, 0.0 }
 0x39d   : > { %v1008_v58 = vpack.c.bf16 %v994_v42, %v993_v54  ;;  %v992_v52 = vsel %vm912_vm7, %v852_v14, %v2092_v61  ;;  %2550 = vpow2.f32 %v963_v62  ;;  %v965_v1 = vmul.f32 1.442695, %v938_v63 }
 0x39e   : > { %v1007_v60 = vpack.c.bf16 %v992_v52, %v991_v51  ;;  %v2306_v8 = vpop.f32.mrb[28].mxu0  ;;  %2552 = vpow2.f32 %v959_v55  ;;  %v961_v17 = vmul.f32 1.442695, %v936_v0  ;;  %vm919_vm14 = vcmp.gt.f32.partialorder %v3021_v23, 0.0 }
 0x39f   : > { %v2543_v11 = vpop.eup %2542  ;;  %v3037_v20 = vadd.f32 %v2306_v8, %v2992_v59  ;;  %v896_v12 = vpop.f32.mrb[29].mxu0  ;;  %2554 = vpow2.f32 %v965_v1  ;;  %vm920_vm15 = vcmp.gt.f32.partialorder %v3031_v53, 0.0 }
 0x3a0   : > { %v2545_v13 = vpop.eup %2544  ;;  %v2097_v30 = vadd.f32 -1.0, %v2543_v11  ;;  %v3040_v2 = vadd.f32 %v896_v12, %v2992_v59  ;;  %v2307_v14 = vpop.f32.mrb[30].mxu0  ;;  %2312 = vmatprep.mubr.msk.bf16.mxu1 %vm1027_vm3, %v1007_v60  ;;  %v1029_v15 = vsel %vm1027_vm3, %v1007_v60, 0  ;;  %2556 = vpow2.f32 %v961_v17 }
 0x3a1   : > { %v2547_v37 = vpop.eup %2546  ;;  %v2095_v16 = vadd.f32 -1.0, %v2545_v13  ;;  %v941_v44 = vmin.f32 %v3037_v20, 0.0  ;;  %v899_v45 = vpop.f32.mrb[31].mxu0  ;;  %2313 = vmatmul.mubr.msk.bf16.vlgmr.msra.gmra.mrb[4].mxu1 %vm1027_vm3, %v1008_v58  ;;  %2329 = vmatpush3.bf16.xpose.msra.mxu0 %v1029_v15  ;;  %v908_v57 = vadd.f32 %v2307_v14, %v2992_v59  ;;  %vm925_vm1 = vcmp.gt.f32.partialorder %v3037_v20, 0.0 }
 0x3a2   : > { %v2549_v56 = vpop.eup %2548  ;;  %v2098_v31 = vadd.f32 -1.0, %v2547_v37  ;;  %v939_v19 = vmin.f32 %v3040_v2, 0.0  ;;  %2330 = vmatprep.subr.bf16.mxu0 %v2663_v3  ;;  %v997_v25 = vsel %vm917_vm8, %v3002_v18, %v2097_v30  ;;  %v900_v29 = vadd.f32 %v899_v45, %v2992_v59 }
 0x3a3   : > { %v2096_v26 = vadd.f32 -1.0, %v2549_v56  ;;  %v971_v27 = vmul.f32 1.442695, %v941_v44  ;;  %v995_v33 = vsel %vm915_vm9, %v3005_v21, %v2095_v16  ;;  %v942_v18 = vmin.f32 %v908_v57, 0.0 }
 0x3a4   : > { %v998_v28 = vsel %vm918_vm10, %v3009_v24, %v2098_v31  ;;  %v967_v32 = vmul.f32 1.442695, %v939_v19  ;;  %v940_v41 = vmin.f32 %v900_v29, 0.0  ;;  %v1032_v24 = vsel %vm1027_vm3, %v1008_v58, 0 }
 0x3a5   : > { %v1010_v35 = vpack.c.bf16 %v998_v28, %v997_v25  ;;  %v996_v36 = vsel %vm916_vm11, %v3013_v9, %v2096_v26  ;;  %2558 = vpow2.f32 %v971_v27  ;;  %v973_v34 = vmul.f32 1.442695, %v942_v18 }
 0x3a6   : > { %v1009_v40 = vpack.c.bf16 %v996_v36, %v995_v33  ;;  %2560 = vpow2.f32 %v967_v32  ;;  %v969_v48 = vmul.f32 1.442695, %v940_v41  ;;  %vm926_vm2 = vcmp.gt.f32.partialorder %v908_v57, 0.0 }
 0x3a7   : > { %v2551_v10 = vpop.eup %2550  ;;  %2562 = vpow2.f32 %v973_v34  ;;  %vm923_vm4 = vcmp.gt.f32.partialorder %v3040_v2, 0.0  ;;  %vm924_vm5 = vcmp.gt.f32.partialorder %v900_v29, 0.0  ;;  %v1038_v12 = vsel %vm1027_vm3, %v1010_v35, 0 }
 0x3a8   : > { %2316 = vmatprep.mubr.msk.bf16.mxu1 %vm1027_vm3, %v1009_v40  ;;  %v2553_v43 = vpop.eup %2552  ;;  %v2101_v59 = vadd.f32 -1.0, %v2551_v10  ;;  %2564 = vpow2.f32 %v969_v48  ;;  %v1035_v55 = vsel %vm1027_vm3, %v1009_v40, 0  ;;  %v1149_v15 = vshrl.u32 %v2777_v38, 16 }
 0x3a9   : > { %2317 = vmatmul.mubr.msk.bf16.gmra.mrb[8].mxu1 %vm1027_vm3, %v1010_v35  ;;  %2331 = vmatpush3.bf16.xpose.msra.mxu0 %v1032_v24  ;;  %v2555_v21 = vpop.eup %2554  ;;  %v2099_v49 = vadd.f32 -1.0, %v2553_v43 }
 0x3aa   : > { %2332 = vmatprep.subr.bf16.mxu0 %v2663_v3  ;;  %v2102_v9 = vadd.f32 -1.0, %v2555_v21  ;;  %v2557_v7 = vpop.eup %2556  ;;  %v1001_v50 = vsel %vm921_vm12, %v3018_v39, %v2101_v59 }
 0x3ab   : > { %v2100_v54 = vadd.f32 -1.0, %v2557_v7  ;;  %v999_v62 = vsel %vm919_vm14, %v3021_v23, %v2099_v49 }
 0x3ac   : > { %v1002_v46 = vsel %vm922_vm13, %v3025_v22, %v2102_v9 }
 0x3ad   : > { %v1012_v47 = vpack.c.bf16 %v1002_v46, %v1001_v50  ;;  %v1000_v42 = vsel %vm920_vm15, %v3031_v53, %v2100_v54 }
 0x3ae   : > { %v1011_v51 = vpack.c.bf16 %v1000_v42, %v999_v62 }
 0x3af   : > { %v2559_v61 = vpop.eup %2558  ;;  %v1044_v30 = vsel %vm1027_vm3, %v1012_v47, 0 }
 0x3b0   : > { %v2561_v63 = vpop.eup %2560  ;;  %v2105_v39 = vadd.f32 -1.0, %v2559_v61  ;;  %2320 = vmatprep.mubr.msk.bf16.mxu1 %vm1027_vm3, %v1011_v51 }
 0x3b1   : > { %2333 = vmatpush3.bf16.xpose.msra.mxu0 %v1035_v55  ;;  %v2563_v22 = vpop.eup %2562  ;;  %v2103_v58 = vadd.f32 -1.0, %v2561_v63  ;;  %2321 = vmatmul.mubr.msk.bf16.gmra.mrb[12].mxu1 %vm1027_vm3, %v1012_v47 }
 0x3b2   : > { %2334 = vmatprep.subr.bf16.mxu0 %v2663_v3  ;;  %v2565_v52 = vpop.eup %2564  ;;  %v2106_v60 = vadd.f32 -1.0, %v2563_v22  ;;  %v1005_v53 = vsel %vm925_vm1, %v3037_v20, %v2105_v39  ;;  %v1041_v20 = vsel %vm1027_vm3, %v1011_v51, 0  ;;  %v2638_v39 = vld [vmem:[%s3424_s1 + $0x8] sm:$0xff] }
 0x3b3   : > { %v2104_v23 = vadd.f32 -1.0, %v2565_v52  ;;  %v1003_v8 = vsel %vm923_vm4, %v3040_v2, %v2103_v58 }
 0x3b4   : > { %v1006_v1 = vsel %vm926_vm2, %v908_v57, %v2106_v60  ;;  %v2639_v60 = vld [vmem:[%s3424_s1] sm:$0xff] }
 0x3b5   : > { %v1014_v11 = vpack.c.bf16 %v1006_v1, %v1005_v53  ;;  %v1004_v0 = vsel %vm924_vm5, %v900_v29, %v2104_v23 }
 0x3b6   : > { %v1013_v13 = vpack.c.bf16 %v1004_v0, %v1003_v8 }
 0x3b7   : > { %v1050_v14 = vsel %vm1027_vm3, %v1014_v11, 0 }
 0x3b8   : > { %2324 = vmatprep.mubr.msk.bf16.mxu1 %vm1027_vm3, %v1013_v13  ;;  %v1047_v2 = vsel %vm1027_vm3, %v1013_v13, 0 }
 0x3b9   : > { %2335 = vmatpush3.bf16.xpose.msra.mxu0 %v1038_v12  ;;  %2325 = vmatmul.mubr.msk.bf16.gmra.mrb[16].mxu1 %vm1027_vm3, %v1014_v11 }
 0x3ba   : > { %2336 = vmatprep.subr.bf16.mxu0 %v2663_v3 }
 0x3c1   : > { %2337 = vmatpush3.bf16.xpose.msra.mxu0 %v1041_v20  ;;  %v2640_v20 = vld [vmem:[%s3424_s1 + $0x10] sm:$0xff] }
 0x3c2   : > { %2338 = vmatprep.subr.bf16.mxu0 %v2663_v3 }
 0x3c9   : > { %2339 = vmatpush3.bf16.xpose.msra.mxu0 %v1044_v30 }
 0x3ca   : > { %2340 = vmatprep.subr.bf16.mxu0 %v2663_v3 }
 0x3d1   : > { %2341 = vmatpush3.bf16.xpose.msra.mxu0 %v1047_v2 }
 0x3d2   : > { %2342 = vmatprep.subr.bf16.mxu0 %v2663_v3 }
 0x3d9   : > { %2343 = vmatpush3.bf16.xpose.msra.mxu0 %v1050_v14 }
 0x3e0   : > { %2345 = vmatmul.mubr.msk.bf16.vlgmr.msra.gmra.mrb[32].mxu0 %vm1027_vm3, %v1149_v15 }
 0x474   : > { %v2314_v37 = vpop.f32.mrb[4].mxu1 }
 0x475   : > { %1206 = vperm.xlu1 %2414, %v2314_v37   ;;  %v1086_v16 = vpop.f32.mrb[5].mxu1 }
 0x476   : > { %v2315_v17 = vpop.f32.mrb[6].mxu1 }
 0x477   : > { %v1511_v44 = vpack.c.bf16 %v2315_v17, %v2314_v37  ;;  %v1089_v45 = vpop.f32.mrb[7].mxu1 }
 0x478   : > { %v1510_v56 = vpack.c.bf16 %v1089_v45, %v1086_v16  ;;  %1201 = vperm.xlu0 %2413, %v1089_v45  }
 0x479   : > { %1196 = vperm.xlu1 %2414, %v1086_v16  }
 0x47a   : > { %2348 = vmatprep.subr.bf16.mxu1 %v1510_v56 }
 0x47b   : > { %2349 = vmatpush3.bf16.msra.mxu1 %v1510_v56  ;;  %v2642_v56 = vld [vmem:[%s3424_s1 + $0x20] sm:$0xff] }
 0x47c   : > { %v2318_v31 = vpop.f32.mrb[8].mxu1  ;;  %2350 = vmatprep.subr.bf16.mxu1 %v1511_v44 }
 0x47d   : > { %1211 = vperm.xlu1 %2414, %v2315_v17   ;;  %1226 = vperm.xlu0 %2413, %v2318_v31   ;;  %v1102_v19 = vpop.f32.mrb[9].mxu1 }
 0x47e   : > { %v2319_v25 = vpop.f32.mrb[10].mxu1 }
 0x47f   : > { %v1513_v26 = vpack.c.bf16 %v2319_v25, %v2318_v31  ;;  %v1105_v27 = vpop.f32.mrb[11].mxu1  ;;  %2351 = vmatpush3.bf16.msra.mxu1 %v1511_v44  ;;  %v2641_v44 = vld [vmem:[%s3424_s1 + $0x18] sm:$0xff] }
 0x480   : > { %v1512_v28 = vpack.c.bf16 %v1105_v27, %v1102_v19 }
 0x481   : > { %1216 = vperm.xlu0 %2413, %v1102_v19   ;;  %1221 = vperm.xlu1 %2414, %v1105_v27  }
 0x482   : > { %2352 = vmatprep.subr.bf16.mxu1 %v1512_v28 }
 0x483   : > { %2353 = vmatpush3.bf16.msra.mxu1 %v1512_v28 }
 0x484   : > { %2354 = vmatprep.subr.bf16.mxu1 %v1513_v26  ;;  %v2322_v32 = vpop.f32.mrb[12].mxu1 }
 0x485   : > { %1231 = vperm.xlu1 %2414, %v2319_v25   ;;  %1246 = vperm.xlu0 %2413, %v2322_v32   ;;  %v1118_v57 = vpop.f32.mrb[13].mxu1 }
 0x486   : > { %v2323_v29 = vpop.f32.mrb[14].mxu1 }
 0x487   : > { %2355 = vmatpush3.bf16.msra.mxu1 %v1513_v26  ;;  %v1515_v33 = vpack.c.bf16 %v2323_v29, %v2322_v32  ;;  %v1121_v35 = vpop.f32.mrb[15].mxu1 }
 0x488   : > { %v1514_v36 = vpack.c.bf16 %v1121_v35, %v1118_v57 }
 0x489   : > { %1241 = vperm.xlu1 %2414, %v1121_v35   ;;  %1236 = vperm.xlu0 %2413, %v1118_v57   ;;  %v2643_v57 = vld [vmem:[%s3424_s1 + $0x28] sm:$0xff] }
 0x48a   : > { %2356 = vmatprep.subr.bf16.mxu1 %v1514_v36 }
 0x48b   : > { %2357 = vmatpush3.bf16.msra.mxu1 %v1514_v36 }
 0x48c   : > { %v2326_v40 = vpop.f32.mrb[16].mxu1  ;;  %2358 = vmatprep.subr.bf16.mxu1 %v1515_v33 }
 0x48d   : > { %1251 = vperm.xlu1 %2414, %v2323_v29   ;;  %1266 = vperm.xlu0 %2413, %v2326_v40   ;;  %v1134_v18 = vpop.f32.mrb[17].mxu1 }
 0x48e   : > { %v2327_v10 = vpop.f32.mrb[18].mxu1 }
 0x48f   : > { %v1517_v41 = vpack.c.bf16 %v2327_v10, %v2326_v40  ;;  %v1137_v34 = vpop.f32.mrb[19].mxu1  ;;  %2359 = vmatpush3.bf16.msra.mxu1 %v1515_v33  ;;  %v2644_v33 = vld [vmem:[%s3424_s1 + $0x30] sm:$0xff] }
 0x490   : > { %v1516_v24 = vpack.c.bf16 %v1137_v34, %v1134_v18 }
 0x491   : > { %1261 = vperm.xlu1 %2414, %v1137_v34   ;;  %1256 = vperm.xlu0 %2413, %v1134_v18  }
 0x492   : > { %2360 = vmatprep.subr.bf16.mxu1 %v1516_v24 }
 0x493   : > { %2361 = vmatpush3.bf16.msra.mxu1 %v1516_v24 }
 0x494   : > { %2362 = vmatprep.subr.bf16.mxu1 %v1517_v41 }
 0x495   : > { %1271 = vperm.xlu1 %2414, %v2327_v10  }
 0x497   : > { %2363 = vmatpush3.bf16.msra.mxu1 %v1517_v41 }
 0x498   : > { %2380 = vmatprep.subr.bf16.mxu1 %v2663_v3 }
 0x4b3   : > { %v1188_v43 = vpop.f32.mrb[32].mxu0 }
 0x4b4   : > { %v2346_v59 = vpop.f32.mrb[33].mxu0  ;;  %v3097_v9 = vrot.slane %v1188_v43, %v568_v6 }
 0x4b5   : > { %v1191_v48 = vpop.f32.mrb[34].mxu0  ;;  %v2645_v59 = vld [vmem:[%s3424_s1 + $0x38] sm:$0xff] }
 0x4b6   : > { %v2347_v21 = vpop.f32.mrb[35].mxu0 }
 0x4f4   : > { %v1207_v49 = vpop.permute.xlu1 %1206 }
 0x4f5   : > { %v1280_v7 = vadd.f32 %v3097_v9, %v1207_v49 }
 0x4f7   : > { %v1202_v50 = vpop.permute.xlu0 %1201  ;;  %v1312_v62 = vmul.f32 0.2, %v1280_v7  ;;  %vm1296_vm8 = vcmp.gt.f32.partialorder %v1280_v7, 0.0 }
 0x4f8   : > { %v1279_v46 = vadd.f32 %v3097_v9, %v1202_v50  ;;  %v1197_v47 = vpop.permute.xlu1 %1196 }
 0x4f9   : > { %v1278_v54 = vadd.f32 %v3097_v9, %v1197_v47  ;;  %v1328_v1 = vsel %vm1296_vm8, %v1280_v7, %v1312_v62  ;;  %v2646_v47 = vld [vmem:[%s3424_s1 + $0x40] sm:$0xff] }
 0x4fa   : > { %v1311_v61 = vmul.f32 0.2, %v1279_v46  ;;  %vm1295_vm6 = vcmp.gt.f32.partialorder %v1279_v46, 0.0  ;;  %v3121_v30 = vadd.f32 %v2640_v20, %v1328_v1 }
 0x4fb   : > { %v1310_v42 = vmul.f32 0.2, %v1278_v54  ;;  %vm1294_vm7 = vcmp.gt.f32.partialorder %v1278_v54, 0.0 }
 0x4fc   : > { %v1212_v55 = vpop.permute.xlu1 %1211  ;;  %v1227_v63 = vpop.permute.xlu0 %1226  ;;  %v1327_v51 = vsel %vm1295_vm6, %v1279_v46, %v1311_v61 }
 0x4fd   : > { %v1281_v6 = vadd.f32 %v3097_v9, %v1212_v55  ;;  %v3106_v22 = vadd.f32 %v2638_v39, %v1327_v51  ;;  %v1326_v58 = vsel %vm1294_vm7, %v1278_v54, %v1310_v42  ;;  %v1284_v52 = vadd.f32 %v3097_v9, %v1227_v63  ;;  %v2647_v42 = vld [vmem:[%s3424_s1 + $0x48] sm:$0xff] }
 0x4fe   : > { %v3112_v23 = vadd.f32 %v2639_v60, %v1326_v58  ;;  %v2648_v60 = vld [vmem:[%s3424_s1 + $0x50] sm:$0xff] }
 0x4ff   : > { %v1313_v53 = vmul.f32 0.2, %v1281_v6  ;;  %1360 = vmax.xlane.f32.xlu1 %v3106_v22  ;;  %vm1297_vm9 = vcmp.gt.f32.partialorder %v1281_v6, 0.0  ;;  %v1316_v13 = vmul.f32 0.2, %v1284_v52  ;;  %vm1300_vm12 = vcmp.gt.f32.partialorder %v1284_v52, 0.0 }
 0x500   : > { %v1217_v8 = vpop.permute.xlu0 %1216  ;;  %v1222_v11 = vpop.permute.xlu1 %1221  ;;  %1358 = vmax.xlane.f32.xlu0 %v3112_v23 }
 0x501   : > { %v1282_v0 = vadd.f32 %v3097_v9, %v1217_v8  ;;  %v1283_v12 = vadd.f32 %v3097_v9, %v1222_v11  ;;  %v1329_v15 = vsel %vm1297_vm9, %v1281_v6, %v1313_v53  ;;  %v1332_v27 = vsel %vm1300_vm12, %v1284_v52, %v1316_v13 }
 0x502   : > { %v3128_v45 = vadd.f32 %v2641_v44, %v1329_v15  ;;  %v3146_v35 = vadd.f32 %v2644_v33, %v1332_v27  ;;  %v2650_v15 = vld [vmem:[%s3424_s1 + $0x60] sm:$0xff] }
 0x503   : > { %v1314_v2 = vmul.f32 0.2, %v1282_v0  ;;  %v1315_v14 = vmul.f32 0.2, %v1283_v12  ;;  %vm1298_vm10 = vcmp.gt.f32.partialorder %v1282_v0, 0.0  ;;  %vm1299_vm11 = vcmp.gt.f32.partialorder %v1283_v12, 0.0 }
 0x504   : > { %v1232_v37 = vpop.permute.xlu1 %1231  ;;  %1362 = vmax.xlane.f32.xlu0 %v3121_v30  ;;  %v1247_v25 = vpop.permute.xlu0 %1246 }
 0x505   : > { %v1285_v16 = vadd.f32 %v3097_v9, %v1232_v37  ;;  %v1330_v17 = vsel %vm1298_vm10, %v1282_v0, %v1314_v2  ;;  %v1331_v26 = vsel %vm1299_vm11, %v1283_v12, %v1315_v14  ;;  %v1288_v28 = vadd.f32 %v3097_v9, %v1247_v25  ;;  %v2649_v0 = vld [vmem:[%s3424_s1 + $0x58] sm:$0xff] }
 0x506   : > { %v3133_v31 = vadd.f32 %v2642_v56, %v1330_v17  ;;  %v3141_v29 = vadd.f32 %v2643_v57, %v1331_v26  ;;  %v2651_v17 = vld [vmem:[%s3424_s1 + $0x68] sm:$0xff]  ;;  %v2652_v56 = vld [vmem:[%s3424_s1 + $0x70] sm:$0xff]  ;;  %v2653_v25 = vld [vmem:[%s3424_s1 + $0x78] sm:$0xff] }
 0x507   : > { %v1317_v19 = vmul.f32 0.2, %v1285_v16  ;;  %vm1301_vm13 = vcmp.gt.f32.partialorder %v1285_v16, 0.0  ;;  %v1320_v34 = vmul.f32 0.2, %v1288_v28  ;;  %vm1304_vm1 = vcmp.gt.f32.partialorder %v1288_v28, 0.0 }
 0x508   : > { %1364 = vmax.xlane.f32.xlu0 %v3128_v45  ;;  %1366 = vmax.xlane.f32.xlu1 %v3133_v31  ;;  %v1242_v32 = vpop.permute.xlu1 %1241  ;;  %v1237_v36 = vpop.permute.xlu0 %1236 }
 0x509   : > { %v1287_v40 = vadd.f32 %v3097_v9, %v1242_v32  ;;  %v1333_v18 = vsel %vm1301_vm13, %v1285_v16, %v1317_v19  ;;  %v1286_v10 = vadd.f32 %v3097_v9, %v1237_v36  ;;  %v1336_v63 = vsel %vm1304_vm1, %v1288_v28, %v1320_v34 }
 0x50a   : > { %v3155_v48 = vadd.f32 %v2645_v59, %v1333_v18  ;;  %v3177_v53 = vadd.f32 %v2648_v60, %v1336_v63 }
 0x50b   : > { %v1319_v41 = vmul.f32 0.2, %v1287_v40  ;;  %vm1303_vm14 = vcmp.gt.f32.partialorder %v1287_v40, 0.0  ;;  %v1318_v24 = vmul.f32 0.2, %v1286_v10  ;;  %vm1302_vm15 = vcmp.gt.f32.partialorder %v1286_v10, 0.0 }
 0x50c   : > { %1368 = vmax.xlane.f32.xlu0 %v3141_v29  ;;  %1370 = vmax.xlane.f32.xlu1 %v3146_v35  ;;  %v1252_v43 = vpop.permute.xlu1 %1251  ;;  %v1267_v49 = vpop.permute.xlu0 %1266 }
 0x50d   : > { %v1289_v21 = vadd.f32 %v3097_v9, %v1252_v43  ;;  %v1335_v7 = vsel %vm1303_vm14, %v1287_v40, %v1319_v41  ;;  %v1334_v50 = vsel %vm1302_vm15, %v1286_v10, %v1318_v24  ;;  %v1292_v61 = vadd.f32 %v3097_v9, %v1267_v49 }
 0x50e   : > { %v3162_v54 = vadd.f32 %v2646_v47, %v1334_v50  ;;  %v3168_v55 = vadd.f32 %v2647_v42, %v1335_v7 }
 0x50f   : > { %v1321_v46 = vmul.f32 0.2, %v1289_v21  ;;  %vm1305_vm2 = vcmp.gt.f32.partialorder %v1289_v21, 0.0  ;;  %v1324_v1 = vmul.f32 0.2, %v1292_v61  ;;  %vm1308_vm6 = vcmp.gt.f32.partialorder %v1292_v61, 0.0 }
 0x510   : > { %1372 = vmax.xlane.f32.xlu0 %v3155_v48  ;;  %v1262_v62 = vpop.permute.xlu1 %1261  ;;  %v1257_v51 = vpop.permute.xlu0 %1256  ;;  %1374 = vmax.xlane.f32.xlu1 %v3162_v54 }
 0x511   : > { %v1291_v6 = vadd.f32 %v3097_v9, %v1262_v62  ;;  %v1337_v39 = vsel %vm1305_vm2, %v1289_v21, %v1321_v46  ;;  %v1290_v58 = vadd.f32 %v3097_v9, %v1257_v51  ;;  %v1340_v16 = vsel %vm1308_vm6, %v1292_v61, %v1324_v1 }
 0x512   : > { %v3182_v12 = vadd.f32 %v2649_v0, %v1337_v39  ;;  %v3202_v19 = vadd.f32 %v2652_v56, %v1340_v16 }
 0x513   : > { %v1323_v52 = vmul.f32 0.2, %v1291_v6  ;;  %vm1307_vm4 = vcmp.gt.f32.partialorder %v1291_v6, 0.0  ;;  %v1322_v8 = vmul.f32 0.2, %v1290_v58  ;;  %vm1306_vm5 = vcmp.gt.f32.partialorder %v1290_v58, 0.0 }
 0x514   : > { %1376 = vmax.xlane.f32.xlu0 %v3168_v55  ;;  %v1272_v11 = vpop.permute.xlu1 %1271  ;;  %1378 = vmax.xlane.f32.xlu1 %v3177_v53 }
 0x515   : > { %v1293_v13 = vadd.f32 %v3097_v9, %v1272_v11  ;;  %v1339_v20 = vsel %vm1307_vm4, %v1291_v6, %v1323_v52  ;;  %v1338_v2 = vsel %vm1306_vm5, %v1290_v58, %v1322_v8 }
 0x516   : > { %v3190_v37 = vadd.f32 %v2650_v15, %v1338_v2  ;;  %v3195_v44 = vadd.f32 %v2651_v17, %v1339_v20 }
 0x517   : > { %v1325_v14 = vmul.f32 0.2, %v1293_v13  ;;  %vm1309_vm7 = vcmp.gt.f32.partialorder %v1293_v13, 0.0 }
 0x518   : > { %1380 = vmax.xlane.f32.xlu0 %v3182_v12  ;;  %1382 = vmax.xlane.f32.xlu1 %v3190_v37 }
 0x519   : > { %v1341_v9 = vsel %vm1309_vm7, %v1293_v13, %v1325_v14 }
 0x51a   : > { %v3207_v26 = vadd.f32 %v2653_v25, %v1341_v9 }
 0x51c   : > { %1384 = vmax.xlane.f32.xlu0 %v3195_v44  ;;  %1386 = vmax.xlane.f32.xlu1 %v3202_v19 }
 0x520   : > { %1388 = vmax.xlane.f32.xlu0 %v3207_v26 }
 0x58c   : > { %v1361_v27 = vpop.xlane.xlu1 %1360 }
 0x58d   : > { %v1391_v28 = vsub.f32 %v3106_v22, %v1361_v27  ;;  %v1359_v32 = vpop.xlane.xlu0 %1358 }
 0x58e   : > { %v1390_v57 = vsub.f32 %v3112_v23, %v1359_v32 }
 0x58f   : > { %v1408_v33 = vmul.f32 1.442695, %v1391_v28 }
 0x590   : > { %v1406_v36 = vmul.f32 1.442695, %v1390_v57 }
 0x591   : > { %2566 = vpow2.f32 %v1408_v33  ;;  %v1363_v40 = vpop.xlane.xlu0 %1362 }
 0x592   : > { %2568 = vpow2.f32 %v1406_v36  ;;  %v1392_v18 = vsub.f32 %v3121_v30, %v1363_v40 }
 0x594   : > { %v1410_v10 = vmul.f32 1.442695, %v1392_v18 }
 0x595   : > { %v1365_v41 = vpop.xlane.xlu0 %1364  ;;  %v1367_v34 = vpop.xlane.xlu1 %1366 }
 0x596   : > { %2570 = vpow2.f32 %v1410_v10  ;;  %v1393_v24 = vsub.f32 %v3128_v45, %v1365_v41  ;;  %v1394_v43 = vsub.f32 %v3133_v31, %v1367_v34 }
 0x598   : > { %v1412_v59 = vmul.f32 1.442695, %v1393_v24  ;;  %v1414_v22 = vmul.f32 1.442695, %v1394_v43 }
 0x599   : > { %v1369_v21 = vpop.xlane.xlu0 %1368  ;;  %v1371_v49 = vpop.xlane.xlu1 %1370 }
 0x59a   : > { %2572 = vpow2.f32 %v1412_v59  ;;  %v1395_v23 = vsub.f32 %v3141_v29, %v1369_v21  ;;  %v1396_v7 = vsub.f32 %v3146_v35, %v1371_v49 }
 0x59b   : > { %v3218_v50 = vpop.eup %2566  ;;  %2574 = vpow2.f32 %v1414_v22 }
 0x59c   : > { %v3220_v30 = vpop.eup %2568  ;;  %v1416_v46 = vmul.f32 1.442695, %v1395_v23  ;;  %v1418_v47 = vmul.f32 1.442695, %v1396_v7  ;;  %1440 = vadd.xlane.f32.xlu0 %v3218_v50 }
 0x59d   : > { %v1373_v45 = vpop.xlane.xlu0 %1372  ;;  %1438 = vadd.xlane.f32.xlu1 %v3220_v30  ;;  %v1375_v35 = vpop.xlane.xlu1 %1374 }
 0x59e   : > { %2576 = vpow2.f32 %v1416_v46  ;;  %v1397_v31 = vsub.f32 %v3155_v48, %v1373_v45  ;;  %v1398_v62 = vsub.f32 %v3162_v54, %v1375_v35 }
 0x59f   : > { %2578 = vpow2.f32 %v1418_v47 }
 0x5a0   : > { %v3225_v61 = vpop.eup %2570  ;;  %v1420_v29 = vmul.f32 1.442695, %v1397_v31  ;;  %v1422_v51 = vmul.f32 1.442695, %v1398_v62 }
 0x5a1   : > { %v1377_v42 = vpop.xlane.xlu0 %1376  ;;  %1442 = vadd.xlane.f32.xlu1 %v3225_v61  ;;  %v1379_v58 = vpop.xlane.xlu1 %1378 }
 0x5a2   : > { %2580 = vpow2.f32 %v1420_v29  ;;  %v1399_v63 = vsub.f32 %v3168_v55, %v1377_v42  ;;  %v1400_v48 = vsub.f32 %v3177_v53, %v1379_v58 }
 0x5a3   : > { %2582 = vpow2.f32 %v1422_v51 }
 0x5a4   : > { %v3230_v6 = vpop.eup %2572  ;;  %v1424_v39 = vmul.f32 1.442695, %v1399_v63  ;;  %v1426_v1 = vmul.f32 1.442695, %v1400_v48 }
 0x5a5   : > { %v3232_v52 = vpop.eup %2574  ;;  %v1381_v60 = vpop.xlane.xlu0 %1380  ;;  %1444 = vadd.xlane.f32.xlu0 %v3230_v6 }
 0x5a6   : > { %2584 = vpow2.f32 %v1424_v39  ;;  %v1401_v54 = vsub.f32 %v3182_v12, %v1381_v60  ;;  %1446 = vadd.xlane.f32.xlu1 %v3232_v52  ;;  %v1383_v11 = vpop.xlane.xlu1 %1382 }
 0x5a7   : > { %2586 = vpow2.f32 %v1426_v1  ;;  %v1402_v13 = vsub.f32 %v3190_v37, %v1383_v11 }
 0x5a8   : > { %v3238_v55 = vpop.eup %2576  ;;  %v1428_v8 = vmul.f32 1.442695, %v1401_v54 }
 0x5a9   : > { %v3240_v0 = vpop.eup %2578  ;;  %v1385_v20 = vpop.xlane.xlu0 %1384  ;;  %1448 = vadd.xlane.f32.xlu0 %v3238_v55  ;;  %v1430_v12 = vmul.f32 1.442695, %v1402_v13 }
 0x5aa   : > { %2588 = vpow2.f32 %v1428_v8  ;;  %v1403_v53 = vsub.f32 %v3195_v44, %v1385_v20  ;;  %1450 = vadd.xlane.f32.xlu1 %v3240_v0  ;;  %v1387_v15 = vpop.xlane.xlu1 %1386 }
 0x5ab   : > { %2590 = vpow2.f32 %v1430_v12  ;;  %v1404_v16 = vsub.f32 %v3202_v19, %v1387_v15 }
 0x5ac   : > { %v3246_v2 = vpop.eup %2580  ;;  %v1432_v14 = vmul.f32 1.442695, %v1403_v53 }
 0x5ad   : > { %v1389_v17 = vpop.xlane.xlu0 %1388  ;;  %1452 = vadd.xlane.f32.xlu0 %v3246_v2  ;;  %v3251_v9 = vpop.eup %2582  ;;  %v1434_v56 = vmul.f32 1.442695, %v1404_v16 }
 0x5ae   : > { %2592 = vpow2.f32 %v1432_v14  ;;  %v1405_v37 = vsub.f32 %v3207_v26, %v1389_v17  ;;  %1454 = vadd.xlane.f32.xlu1 %v3251_v9 }
 0x5af   : > { %2594 = vpow2.f32 %v1434_v56 }
 0x5b0   : > { %v3253_v44 = vpop.eup %2584  ;;  %v1436_v25 = vmul.f32 1.442695, %v1405_v37 }
 0x5b1   : > { %1456 = vadd.xlane.f32.xlu0 %v3253_v44  ;;  %v3257_v27 = vpop.eup %2586 }
 0x5b2   : > { %2596 = vpow2.f32 %v1436_v25  ;;  %1458 = vadd.xlane.f32.xlu1 %v3257_v27 }
 0x5b4   : > { %v3259_v19 = vpop.eup %2588 }
 0x5b5   : > { %1460 = vadd.xlane.f32.xlu0 %v3259_v19  ;;  %v3263_v26 = vpop.eup %2590 }
 0x5b6   : > { %1462 = vadd.xlane.f32.xlu1 %v3263_v26 }
 0x5b8   : > { %v3265_v28 = vpop.eup %2592 }
 0x5b9   : > { %1464 = vadd.xlane.f32.xlu0 %v3265_v28  ;;  %v3269_v32 = vpop.eup %2594 }
 0x5ba   : > { %1466 = vadd.xlane.f32.xlu1 %v3269_v32 }
 0x5bc   : > { %v3271_v57 = vpop.eup %2596 }
 0x5bd   : > { %1468 = vadd.xlane.f32.xlu0 %v3271_v57 }
 0x629   : > { %v1441_v33 = vpop.xlane.xlu0 %1440 }
 0x62a   : > { %2598 = vrcp.f32 %v1441_v33  ;;  %v1439_v36 = vpop.xlane.xlu1 %1438 }
 0x62b   : > { %2600 = vrcp.f32 %v1439_v36 }
 0x62e   : > { %v1443_v40 = vpop.xlane.xlu1 %1442 }
 0x62f   : > { %2602 = vrcp.f32 %v1443_v40  ;;  %v2433_v40 = vld [vmem:[%s3428_s5 + $0x34] ss:$8 sps:$4 sm:$0xff]  }
 0x632   : > { %v1445_v18 = vpop.xlane.xlu0 %1444 }
 0x633   : > { %2604 = vrcp.f32 %v1445_v18  ;;  %v1447_v10 = vpop.xlane.xlu1 %1446  ;;  %v2431_v18 = vld [vmem:[%s3428_s5 + $0x30] ss:$8 sps:$4 sm:$0xff]  }
 0x634   : > { %v2599_v41 = vpop.eup %2598  ;;  %2606 = vrcp.f32 %v1447_v10  ;;  %v2436_v10 = vld [vmem:[%s3428_s5 + $0x44] ss:$8 sps:$4 sm:$0xff]  }
 0x635   : > { %v2601_v34 = vpop.eup %2600  ;;  %v1473_v24 = vmul.f32 %v2599_v41, %v3218_v50  ;;  %v2434_v41 = vld [vmem:[%s3428_s5 + $0x40] ss:$8 sps:$4 sm:$0xff]  }
 0x636   : > { %v1449_v43 = vpop.xlane.xlu0 %1448  ;;  %v1471_v59 = vmul.f32 %v2601_v34, %v3220_v30  ;;  %v2439_v34 = vld [vmem:[%s3428_s5 + $0x54] ss:$8 sps:$4 sm:$0xff]  }
 0x637   : > { %2608 = vrcp.f32 %v1449_v43  ;;  %v1451_v22 = vpop.xlane.xlu1 %1450  ;;  %v2442_v43 = vld [vmem:[%s3428_s5 + $0x64] ss:$8 sps:$4 sm:$0xff]  }
 0x638   : > { %v1502_v21 = vpack.c.bf16 %v1473_v24, %v1471_v59  ;;  %2610 = vrcp.f32 %v1451_v22  ;;  %v2437_v24 = vld [vmem:[%s3428_s5 + $0x50] ss:$8 sps:$4 sm:$0xff]   ;;  %v2440_v59 = vld [vmem:[%s3428_s5 + $0x60] ss:$8 sps:$4 sm:$0xff]   ;;  %v1520_v22 = vsub.s32 3, %v2783_v5 }
 0x639   : > { %v2603_v23 = vpop.eup %2602 }
 0x63a   : > { %v1453_v49 = vpop.xlane.xlu0 %1452  ;;  %2364 = vmatprep.mubr.bf16.mxu1 %v1502_v21  ;;  %v1475_v47 = vmul.f32 %v2603_v23, %v3225_v61  ;;  %v3339_v21 = vld [vmem:[%s3426_s3] sm:$0xff] }
 0x63b   : > { %2612 = vrcp.f32 %v1453_v49  ;;  %v1455_v46 = vpop.xlane.xlu1 %1454  ;;  %v1521_v49 = vrot.slane %v3339_v21, %v1520_v22 }
 0x63c   : > { %2614 = vrcp.f32 %v1455_v46 }
 0x63d   : > { %v2605_v7 = vpop.eup %2604 }
 0x63e   : > { %v1477_v45 = vmul.f32 %v2605_v7, %v3230_v6  ;;  %v1457_v31 = vpop.xlane.xlu0 %1456  ;;  %v2607_v50 = vpop.eup %2606 }
 0x63f   : > { %2616 = vrcp.f32 %v1457_v31  ;;  %v1459_v35 = vpop.xlane.xlu1 %1458  ;;  %v1479_v42 = vmul.f32 %v2607_v50, %v3232_v52 }
 0x640   : > { %v1503_v29 = vpack.c.bf16 %v1477_v45, %v1475_v47  ;;  %2618 = vrcp.f32 %v1459_v35 }
 0x641   : > { %v2609_v30 = vpop.eup %2608 }
 0x642   : > { %v1461_v62 = vpop.xlane.xlu0 %1460  ;;  %2365 = vmatmul.mubr.bf16.vlgmr.msra.gmra.mrb[20].mxu1 %v1503_v29  ;;  %v1481_v63 = vmul.f32 %v2609_v30, %v3238_v55  ;;  %v2611_v51 = vpop.eup %2610 }
 0x643   : > { %2620 = vrcp.f32 %v1461_v62  ;;  %v1463_v58 = vpop.xlane.xlu1 %1462  ;;  %v1483_v48 = vmul.f32 %v2611_v51, %v3240_v0 }
 0x644   : > { %v1504_v39 = vpack.c.bf16 %v1481_v63, %v1479_v42  ;;  %2622 = vrcp.f32 %v1463_v58 }
 0x645   : > { %v2613_v61 = vpop.eup %2612 }
 0x646   : > { %v1465_v6 = vpop.xlane.xlu0 %1464  ;;  %2368 = vmatprep.mubr.bf16.mxu1 %v1504_v39  ;;  %v1485_v60 = vmul.f32 %v2613_v61, %v3246_v2  ;;  %v2615_v54 = vpop.eup %2614 }
 0x647   : > { %2624 = vrcp.f32 %v1465_v6  ;;  %v1467_v11 = vpop.xlane.xlu1 %1466  ;;  %v1487_v55 = vmul.f32 %v2615_v54, %v3251_v9 }
 0x648   : > { %v1505_v1 = vpack.c.bf16 %v1485_v60, %v1483_v48  ;;  %2626 = vrcp.f32 %v1467_v11 }
 0x649   : > { %v2617_v8 = vpop.eup %2616 }
 0x64a   : > { %v1469_v52 = vpop.xlane.xlu0 %1468  ;;  %2369 = vmatmul.mubr.bf16.gmra.mrb[24].mxu1 %v1505_v1  ;;  %v1489_v13 = vmul.f32 %v2617_v8, %v3253_v44  ;;  %v2619_v20 = vpop.eup %2618 }
 0x64b   : > { %2628 = vrcp.f32 %v1469_v52  ;;  %v1491_v0 = vmul.f32 %v2619_v20, %v3257_v27  ;;  %v2422_v27 = vld [vmem:[%s3428_s5] ss:$8 sps:$4 sm:$0xff]  }
 0x64c   : > { %v1506_v53 = vpack.c.bf16 %v1489_v13, %v1487_v55 }
 0x64d   : > { %v2621_v12 = vpop.eup %2620 }
 0x64e   : > { %2372 = vmatprep.mubr.bf16.mxu1 %v1506_v53  ;;  %v1493_v2 = vmul.f32 %v2621_v12, %v3259_v19  ;;  %v2623_v14 = vpop.eup %2622  ;;  %v2424_v19 = vld [vmem:[%s3428_s5 + $0x4] ss:$8 sps:$4 sm:$0xff]  }
 0x64f   : > { %v1495_v17 = vmul.f32 %v2623_v14, %v3263_v26  ;;  %v2427_v26 = vld [vmem:[%s3428_s5 + $0x14] ss:$8 sps:$4 sm:$0xff]   ;;  %1813 = vmatprep.subr.bf16.mxu0 %v2424_v19 }
 0x650   : > { %v1507_v15 = vpack.c.bf16 %v1493_v2, %v1491_v0  ;;  %1814 = vmatpush1.bf16.msra.mxu0 %v2422_v27 }
 0x651   : > { %v2625_v16 = vpop.eup %2624  ;;  %1815 = vmatprep.subr.bf16.mxu0 %v2427_v26 }
 0x652   : > { %2373 = vmatmul.mubr.bf16.gmra.mrb[28].mxu1 %v1507_v15  ;;  %v1497_v37 = vmul.f32 %v2625_v16, %v3265_v28  ;;  %v2627_v9 = vpop.eup %2626  ;;  %v2425_v28 = vld [vmem:[%s3428_s5 + $0x10] ss:$8 sps:$4 sm:$0xff]  }
 0x653   : > { %v1499_v25 = vmul.f32 %v2627_v9, %v3269_v32  ;;  %v2430_v32 = vld [vmem:[%s3428_s5 + $0x24] ss:$8 sps:$4 sm:$0xff]  }
 0x654   : > { %v1508_v56 = vpack.c.bf16 %v1497_v37, %v1495_v17  ;;  %1816 = vmatpush1.bf16.msra.mxu0 %v2425_v28 }
 0x655   : > { %v2629_v44 = vpop.eup %2628  ;;  %1817 = vmatprep.subr.bf16.mxu0 %v2430_v32 }
 0x656   : > { %2376 = vmatprep.mubr.bf16.mxu1 %v1508_v56  ;;  %v1501_v33 = vmul.f32 %v2629_v44, %v3271_v57  ;;  %v2428_v57 = vld [vmem:[%s3428_s5 + $0x20] ss:$8 sps:$4 sm:$0xff]  }
 0x658   : > { %v1509_v36 = vpack.c.bf16 %v1501_v33, %v1499_v25  ;;  %1818 = vmatpush1.bf16.msra.mxu0 %v2428_v57  ;;  %v1628_v57 = vrot.slane %v2777_v38, 2 }
 0x659   : > { %1819 = vmatprep.subr.bf16.mxu0 %v2433_v40  ;;  %v2445_v40 = vld [vmem:[%s3428_s5 + $0x74] ss:$8 sps:$4 sm:$0xff]  }
 0x65a   : > { %2377 = vmatmul.mubr.bf16.gmra.mrb[32].mxu1 %v1509_v36 }
 0x65b   : > { %2396 = vmatprep.mubr.msk.bf16.mxu1 %vm2664_vm0, %v2663_v3  ;;  %vm2015_vm0 = vcmp.lt.s32.totalorder %v566_v4, 256 }
 0x65c   : > { %1820 = vmatpush1.bf16.msra.mxu0 %v2431_v18  ;;  %v2443_v18 = vld [vmem:[%s3428_s5 + $0x70] ss:$8 sps:$4 sm:$0xff]  }
 0x65d   : > { %1821 = vmatprep.subr.bf16.mxu0 %v2436_v10  ;;  %v2666_v10 = vmov 0  }
 0x65e   : > { %1845 = vmatprep.mubr.bf16.mxu0 %v2666_v10  ;;  %2415 = vset.pattern.permute.xlu1 %v2666_v10 }
 0x65f   : > { %1977 = vperm.xlu1 %2415, %v3339_v21   ;;  %2416 = vset.pattern.permute.xlu0 %v2666_v10  ;;  %v2449_v21 = vld [vmem:[%s3427_s4 + $0x10] ss:$8 sps:$4 sm:$0xff]  }
 0x660   : > { %1822 = vmatpush1.bf16.msra.mxu0 %v2434_v41 }
 0x661   : > { %1823 = vmatprep.subr.bf16.mxu0 %v2439_v34 }
 0x664   : > { %1824 = vmatpush1.bf16.msra.mxu0 %v2437_v24 }
 0x665   : > { %1825 = vmatprep.subr.bf16.mxu0 %v2442_v43  ;;  %v2446_v43 = vld [vmem:[%s3427_s4] ss:$8 sps:$4 sm:$0xff]  }
 0x668   : > { %1826 = vmatpush1.bf16.msra.mxu0 %v2440_v59 }
 0x669   : > { %1827 = vmatprep.subr.bf16.mxu0 %v2445_v40 }
 0x66c   : > { %1828 = vmatpush1.bf16.msra.mxu0 %v2443_v18 }
 0x715   : > { %v2366_v23 = vpop.f32.mrb[20].mxu1 }
 0x716   : > { %v1556_v7 = vpop.f32.mrb[21].mxu1  ;;  %v1565_v47 = vadd.f32 %v2366_v23, %v1521_v49  ;;  %v2454_v23 = vld [vmem:[%s3427_s4 + $0x24] ss:$8 sps:$4 sm:$0xff]  }
 0x717   : > { %v2367_v46 = vpop.f32.mrb[22].mxu1  ;;  %v1557_v50 = vadd.f32 %v1556_v7, %v1521_v49  ;;  %v2452_v7 = vld [vmem:[%s3427_s4 + $0x20] ss:$8 sps:$4 sm:$0xff]  }
 0x718   : > { %v1568_v45 = vadd.f32 %v2367_v46, %v1521_v49  ;;  %v1559_v31 = vpop.f32.mrb[23].mxu1  ;;  %v2457_v46 = vld [vmem:[%s3427_s4 + $0x34] ss:$8 sps:$4 sm:$0xff]  }
 0x719   : > { %v1560_v29 = vadd.f32 %v1559_v31, %v1521_v49  ;;  %v2458_v31 = vld [vmem:[%s3427_s4 + $0x40] ss:$8 sps:$4 sm:$0xff]  }
 0x71a   : > { %v1620_v30 = vpack.c.bf16 %v1568_v45, %v1565_v47  ;;  %v2455_v47 = vld [vmem:[%s3427_s4 + $0x30] ss:$8 sps:$4 sm:$0xff]   ;;  %v2460_v45 = vld [vmem:[%s3427_s4 + $0x44] ss:$8 sps:$4 sm:$0xff]  }
 0x71b   : > { %v1619_v35 = vpack.c.bf16 %v1560_v29, %v1557_v50  ;;  %v2463_v50 = vld [vmem:[%s3427_s4 + $0x54] ss:$8 sps:$4 sm:$0xff]   ;;  %v2461_v29 = vld [vmem:[%s3427_s4 + $0x50] ss:$8 sps:$4 sm:$0xff]  }
 0x71c   : > { %v1636_v8 = vsel %vm1027_vm3, %v1620_v30, 0  ;;  %v2466_v30 = vld [vmem:[%s3427_s4 + $0x64] ss:$8 sps:$4 sm:$0xff]  }
 0x71d   : > { %v2370_v62 = vpop.f32.mrb[24].mxu1  ;;  %v1633_v42 = vsel %vm1027_vm3, %v1619_v35, 0  ;;  %v2464_v35 = vld [vmem:[%s3427_s4 + $0x60] ss:$8 sps:$4 sm:$0xff]  }
 0x71e   : > { %v1572_v63 = vpop.f32.mrb[25].mxu1  ;;  %2381 = vmatpush3.bf16.xpose.msra.mxu1 %v1633_v42  ;;  %v1581_v39 = vadd.f32 %v2370_v62, %v1521_v49  ;;  %v2469_v62 = vld [vmem:[%s3427_s4 + $0x74] ss:$8 sps:$4 sm:$0xff]   ;;  %v2467_v42 = vld [vmem:[%s3427_s4 + $0x70] ss:$8 sps:$4 sm:$0xff]  }
 0x71f   : > { %v2371_v51 = vpop.f32.mrb[26].mxu1  ;;  %2382 = vmatprep.subr.bf16.mxu1 %v2663_v3  ;;  %v1573_v6 = vadd.f32 %v1572_v63, %v1521_v49 }
 0x720   : > { %v1584_v61 = vadd.f32 %v2371_v51, %v1521_v49  ;;  %v1575_v58 = vpop.f32.mrb[27].mxu1 }
 0x721   : > { %v1576_v48 = vadd.f32 %v1575_v58, %v1521_v49  ;;  %v1978_v58 = vpop.permute.xlu1 %1977 }
 0x722   : > { %v1622_v60 = vpack.c.bf16 %v1584_v61, %v1581_v39 }
 0x723   : > { %v1621_v54 = vpack.c.bf16 %v1576_v48, %v1573_v6  ;;  %v1979_v6 = vrot.slane %v1978_v58, 6 }
 0x724   : > { %v1642_v27 = vsel %vm1027_vm3, %v1622_v60, 0 }
 0x725   : > { %v2374_v1 = vpop.f32.mrb[28].mxu1  ;;  %v1639_v15 = vsel %vm1027_vm3, %v1621_v54, 0 }
 0x726   : > { %v1588_v11 = vpop.f32.mrb[29].mxu1  ;;  %2383 = vmatpush3.bf16.xpose.msra.mxu1 %v1636_v8  ;;  %v1597_v55 = vadd.f32 %v2374_v1, %v1521_v49 }
 0x727   : > { %v2375_v52 = vpop.f32.mrb[30].mxu1  ;;  %2384 = vmatprep.subr.bf16.mxu1 %v2663_v3  ;;  %v1589_v53 = vadd.f32 %v1588_v11, %v1521_v49 }
 0x728   : > { %v1600_v13 = vadd.f32 %v2375_v52, %v1521_v49  ;;  %v1591_v20 = vpop.f32.mrb[31].mxu1 }
 0x729   : > { %v1592_v12 = vadd.f32 %v1591_v20, %v1521_v49 }
 0x72a   : > { %v1624_v0 = vpack.c.bf16 %v1600_v13, %v1597_v55 }
 0x72b   : > { %v1623_v2 = vpack.c.bf16 %v1592_v12, %v1589_v53 }
 0x72c   : > { %v1648_v26 = vsel %vm1027_vm3, %v1624_v0, 0 }
 0x72d   : > { %v2378_v14 = vpop.f32.mrb[32].mxu1  ;;  %v1645_v19 = vsel %vm1027_vm3, %v1623_v2, 0 }
 0x72e   : > { %v1604_v16 = vpop.f32.mrb[33].mxu1  ;;  %2385 = vmatpush3.bf16.xpose.msra.mxu1 %v1639_v15  ;;  %v1613_v37 = vadd.f32 %v2378_v14, %v1521_v49 }
 0x72f   : > { %v2379_v17 = vpop.f32.mrb[34].mxu1  ;;  %2386 = vmatprep.subr.bf16.mxu1 %v2663_v3  ;;  %v1605_v44 = vadd.f32 %v1604_v16, %v1521_v49  ;;  %v2667_v16 = vmov 1966171168  }
 0x730   : > { %v1616_v9 = vadd.f32 %v2379_v17, %v1521_v49  ;;  %v1607_v56 = vpop.f32.mrb[35].mxu1  ;;  %v1999_v17 = vunpack.c.l.s4 %v2667_v16 }
 0x731   : > { %v1608_v25 = vadd.f32 %v1607_v56, %v1521_v49  ;;  %v2451_v49 = vld [vmem:[%s3427_s4 + $0x14] ss:$8 sps:$4 sm:$0xff]  }
 0x732   : > { %v1626_v33 = vpack.c.bf16 %v1616_v9, %v1613_v37  ;;  %v2000_v37 = vunpack.c.0.s8 %v1999_v17 }
 0x733   : > { %v1625_v36 = vpack.c.bf16 %v1608_v25, %v1605_v44 }
 0x734   : > { %v1654_v32 = vsel %vm1027_vm3, %v1626_v33, 0  ;;  %v2003_v56 = vsub.s32 %v2000_v37, %v2783_v5 }
 0x735   : > { %v1651_v28 = vsel %vm1027_vm3, %v1625_v36, 0 }
 0x736   : > { %2387 = vmatpush3.bf16.xpose.msra.mxu1 %v1642_v27 }
 0x737   : > { %2388 = vmatprep.subr.bf16.mxu1 %v2663_v3 }
 0x73e   : > { %2389 = vmatpush3.bf16.xpose.msra.mxu1 %v1645_v19 }
 0x73f   : > { %2390 = vmatprep.subr.bf16.mxu1 %v2663_v3 }
 0x746   : > { %2391 = vmatpush3.bf16.xpose.msra.mxu1 %v1648_v26 }
 0x747   : > { %2392 = vmatprep.subr.bf16.mxu1 %v2663_v3 }
 0x74e   : > { %2393 = vmatpush3.bf16.xpose.msra.mxu1 %v1651_v28 }
 0x74f   : > { %2394 = vmatprep.subr.bf16.mxu1 %v2663_v3  ;;  %v2448_v3 = vld [vmem:[%s3427_s4 + $0x4] ss:$8 sps:$4 sm:$0xff]  }
 0x750   : > { %1934 = vmatprep.subr.bf16.mxu0 %v2448_v3 }
 0x756   : > { %2395 = vmatpush3.bf16.xpose.msra.mxu1 %v1654_v32 }
 0x75d   : > { %2397 = vmatmul.mubr.msk.bf16.vlgmr.msra.gmra.mrb[36].mxu1 %vm1027_vm3, %v1628_v57 }
 0x830   : > { %v1690_v38 = vpop.f32.mrb[36].mxu1 }
 0x831   : > { %v1696_v41 = vpack.c.bf16 %v1690_v38, %v1690_v38  ;;  %v2398_v34 = vpop.f32.mrb[37].mxu1 }
 0x832   : > { %v1693_v24 = vpop.f32.mrb[38].mxu1 }
 0x833   : > { %v1730_v59 = vshrl.u32 %v1696_v41, 16  ;;  %v2399_v22 = vpop.f32.mrb[39].mxu1 }
 0x835   : > { %1846 = vmatmul.mubr.bf16.vlgmr.msra.gmra.mrb[36].mxu0 %v1730_v59 }
 0x836   : > { %1935 = vmatpush1.bf16.msra.mxu0 %v2446_v43  ;;  %1966 = vmatprep.mubr.bf16.mxu0 %v2666_v10 }
 0x837   : > { %1936 = vmatprep.subr.bf16.mxu0 %v2451_v49 }
 0x83a   : > { %1937 = vmatpush1.bf16.msra.mxu0 %v2449_v21 }
 0x83b   : > { %1938 = vmatprep.subr.bf16.mxu0 %v2454_v23 }
 0x83e   : > { %1939 = vmatpush1.bf16.msra.mxu0 %v2452_v7 }
 0x83f   : > { %1940 = vmatprep.subr.bf16.mxu0 %v2457_v46 }
 0x842   : > { %1941 = vmatpush1.bf16.msra.mxu0 %v2455_v47 }
 0x843   : > { %1942 = vmatprep.subr.bf16.mxu0 %v2460_v45 }
 0x846   : > { %1943 = vmatpush1.bf16.msra.mxu0 %v2458_v31 }
 0x847   : > { %1944 = vmatprep.subr.bf16.mxu0 %v2463_v50 }
 0x84a   : > { %1945 = vmatpush1.bf16.msra.mxu0 %v2461_v29 }
 0x84b   : > { %1946 = vmatprep.subr.bf16.mxu0 %v2466_v30 }
 0x84e   : > { %1947 = vmatpush1.bf16.msra.mxu0 %v2464_v35 }
 0x84f   : > { %1948 = vmatprep.subr.bf16.mxu0 %v2469_v62 }
 0x852   : > { %1949 = vmatpush1.bf16.msra.mxu0 %v2467_v42 }
 0x855   : > { %1967 = vmatmul.mubr.bf16.vlgmr.msra.gmra.mrb[40].mxu0 %v1696_v41 }
 0x908   : > { %v1847_v63 = vpop.f32.mrb[36].mxu0 }
 0x909   : > { %v1849_v51 = vpop.f32.mrb[37].mxu0 }
 0x90a   : > { %v1851_v39 = vpop.f32.mrb[38].mxu0 }
 0x90b   : > { %v1852_v61 = vpop.f32.mrb[39].mxu0 }
 0x928   : > { %v1968_v48 = vpop.f32.mrb[40].mxu0 }
 0x929   : > { %v1969_v60 = vadd.f32 %v1968_v48, %v1847_v63  ;;  %v1970_v54 = vpop.f32.mrb[41].mxu0 }
 0x92a   : > { %v1971_v1 = vadd.f32 %v1970_v54, %v1849_v51  ;;  %v1972_v8 = vpop.f32.mrb[42].mxu0 }
 0x92b   : > { %v1981_v11 = vadd.f32 %v1979_v6, %v1969_v60  ;;  %v1973_v52 = vpop.f32.mrb[43].mxu0 }
 0x92c   : > { %v1982_v55 = vadd.f32 %v1979_v6, %v1971_v1 }
 0x92d   : > { %v1983_v13 = vsub.f32 0.0, %v1981_v11 }
 0x92e   : > { %v1984_v20 = vsub.f32 0.0, %v1982_v55 }
 0x92f   : > { %v1985_v53 = vmul.f32 1.442695, %v1983_v13 }
 0x930   : > { %v1987_v12 = vmul.f32 1.442695, %v1984_v20 }
 0x931   : > { %2630 = vpow2.f32 %v1985_v53 }
 0x932   : > { %2632 = vpow2.f32 %v1987_v12 }
 0x93b   : > { %v2631_v0 = vpop.eup %2630 }
 0x93c   : > { %v2633_v2 = vpop.eup %2632  ;;  %v1989_v14 = vadd.f32 1.0, %v2631_v0 }
 0x93d   : > { %v1990_v15 = vadd.f32 1.0, %v2633_v2 }
 0x93e   : > { %2634 = vrcp.f32 %v1989_v14 }
 0x93f   : > { %2636 = vrcp.f32 %v1990_v15 }
 0x948   : > { %v2635_v9 = vpop.eup %2634 }
 0x949   : > { %v2637_v44 = vpop.eup %2636 }
 0x94a   : > { %v1997_v25 = vcombine.low %v2635_v9, %v2637_v44 }
 0x94c   : > { %v2004_v33 = vrot.slane %v1997_v25, %v2003_v56 }
 0x94e   : > { %v2011_v36 = vrot.slane %v2004_v33, %v2003_v56 }
 0x950   : > { %2017 = vst.msk [vmem:[%s249_s16] sm:$0x3] %vm2015_vm0, %v2011_v36 }
 0x951 PF: > { %s16_s21 = sadd.s32 1, %s2661_s21  }
 0x952   : > { %p13_p4 = scmp.ge.s32.totalorder %s16_s21, 6  }
 0x954   :  { %15 = sbr.rel (!%p13_p4) target bundleno = 1 (0x1), region = 74 }

</bundles_post_ra>
